<compile_context>
chip_gen: v7x
topology: tpu7x:2x2x1
jax: 0.10.0
libtpu: 0.0.40
codegen_flags: <defaults>
</compile_context>

<pallas_src>
import functools

import jax
import jax.numpy as jnp
from jax.experimental import pallas as pl
from jax.experimental.pallas import tpu as pltpu


def _round_up(x, m):
    return (x + m - 1) // m * m


def _fused_embed_mlp_kernel(ids_ref, emb_ref, w1_ref, b1_ref, w2_ref, b2_ref,
                            out_ref, egat_ref):
    """One grid step = one token tile (tm rows), all 1..3 inputs fused.

    ids_ref : (n, M_pad) int32 token ids, SMEM (scalar prefetch).
    emb_ref : (V_pad, E_pad) f32 embedding table, VMEM resident.
    w1_ref  : (E_pad, H_pad) mxu_dtype,  b1_ref: (1, H_pad) f32
    w2_ref  : (H_pad, E_pad) mxu_dtype,  b2_ref: (1, E_pad) f32
    out_ref : (tm, E_pad) f32
    egat_ref: (tm, E_pad) f32 scratch for the gathered embedding rows.
    """
    n_inputs = ids_ref.shape[0]
    v_pad = emb_ref.shape[0]
    h_pad = w1_ref.shape[1]
    tm = out_ref.shape[0]
    mxu_dtype = w1_ref.dtype

    base = pl.program_id(0) * tm

    w1 = w1_ref[...]                                   # (E_pad, H_pad)
    w2 = w2_ref[...]                                   # (H_pad, E_pad)
    # Hoist the bias broadcast out of the unrolled per-input loop
    # (broadcast_in_dim is not CSE'd by JAX).
    b1 = jnp.broadcast_to(b1_ref[...], (tm, h_pad))    # f32

    unroll_rows = tm <= 64                             # short fixed loop -> unroll

    h_sum = jnp.zeros((tm, h_pad), jnp.float32)
    for j in range(n_inputs):                          # static 1..3 -> trace-time unroll
        # In-kernel gather: copy the selected table rows into the scratch tile.
        def gather_row(r, carry, j=j):
            tok = ids_ref[j, base + r]
            # Clamp so out-of-range / padded ids read a valid (or zero-padded)
            # row instead of an unchecked OOB VMEM access.
            tok = jnp.minimum(jnp.maximum(tok, 0), v_pad - 1)
            egat_ref[pl.ds(r, 1), :] = emb_ref[pl.ds(tok, 1), :]
            return carry

        jax.lax.fori_loop(0, tm, gather_row, 0, unroll=unroll_rows)

        e_j = egat_ref[...].astype(mxu_dtype)          # cast only the small tile
        h_j = jnp.dot(e_j, w1, preferred_element_type=jnp.float32) + b1
        h_sum = h_sum + jnp.maximum(h_j, 0.0)          # f32 ReLU (v5e-safe)

    # Single second Linear on the summed hidden state; bias added n times.
    y = jnp.dot(h_sum.astype(mxu_dtype), w2, preferred_element_type=jnp.float32)
    out_ref[...] = (y + jnp.float32(n_inputs) * b2_ref[...]).astype(out_ref.dtype)


@functools.partial(jax.jit, static_argnames=("use_bf16_mxu",))
def _fused_forward(ids, emb, w1, b1, w2, b2, *, use_bf16_mxu=True):
    """ids: (n, M) int32 token ids.  Returns (M, E) float32 = sum_j base(x_j)."""
    n, M = ids.shape
    V, E = emb.shape
    H = w1.shape[1]

    E_pad = _round_up(E, 128)
    H_pad = _round_up(H, 128)
    V_pad = _round_up(V, 128)

    mxu_dtype = jnp.bfloat16 if use_bf16_mxu else jnp.float32
    row_align = 16 if use_bf16_mxu else 8

    # Single tile when M is small (the grid is a sequential loop on 1-TC
    # chips); cap tiles at 256 rows for large M so per-tile VMEM stays modest.
    tm = min(_round_up(M, row_align), 256)
    M_pad = _round_up(M, tm)

    # Zero-pad to lane-dense / tile-aligned shapes.  Padding is exact: padded
    # rows/cols contribute nothing and are sliced off at the end.
    ids_p = jnp.pad(ids.astype(jnp.int32), ((0, 0), (0, M_pad - M)))
    emb_p = jnp.pad(emb, ((0, V_pad - V), (0, E_pad - E)))                 # f32
    w1_p = jnp.pad(w1, ((0, E_pad - E), (0, H_pad - H))).astype(mxu_dtype)
    b1_p = jnp.pad(b1.reshape(1, H), ((0, 0), (0, H_pad - H)))             # f32
    w2_p = jnp.pad(w2, ((0, H_pad - H), (0, E_pad - E))).astype(mxu_dtype)
    b2_p = jnp.pad(b2.reshape(1, E), ((0, 0), (0, E_pad - E)))             # f32

    out = pl.pallas_call(
        _fused_embed_mlp_kernel,
        out_shape=jax.ShapeDtypeStruct((M_pad, E_pad), jnp.float32),
        grid_spec=pltpu.PrefetchScalarGridSpec(
            # Token ids land in SMEM and are available to the kernel directly;
            # no lane-sparse VMEM blocks for index data.
            num_scalar_prefetch=1,
            grid=(M_pad // tm,),
            in_specs=[
                # table + weights: constant block index -> fetched once,
                # VMEM resident across the whole grid.
                pl.BlockSpec((V_pad, E_pad), lambda i, ids: (0, 0)),
                pl.BlockSpec((E_pad, H_pad), lambda i, ids: (0, 0)),
                pl.BlockSpec((1, H_pad), lambda i, ids: (0, 0)),
                pl.BlockSpec((H_pad, E_pad), lambda i, ids: (0, 0)),
                pl.BlockSpec((1, E_pad), lambda i, ids: (0, 0)),
            ],
            out_specs=pl.BlockSpec((tm, E_pad), lambda i, ids: (i, 0)),
            scratch_shapes=[pltpu.VMEM((tm, E_pad), jnp.float32)],
        ),
        compiler_params=pltpu.CompilerParams(
            dimension_semantics=("parallel",)),
    )(ids_p, emb_p, w1_p, b1_p, w2_p, b2_p)

    return out[:M, :E]


def model_with_multiple_inputs(params, x0, x1=None, x2=None, *,
                               use_bf16_mxu=True):
    """Pallas equivalent of ModelWithMultipleInputs.forward.

    x0/x1/x2: int32 token ids of shape (B, S).  Returns (B, S, E) float32.
    """
    emb_tbl, w1, b1, w2, b2 = (params[k] for k in
                               ("embedding", "w1", "b1", "w2", "b2"))
    inputs = [x for x in (x0, x1, x2) if x is not None]
    B, S = inputs[0].shape
    E = emb_tbl.shape[1]

    ids = jnp.stack([x.reshape(-1) for x in inputs], axis=0)   # (n, B*S) int32
    out = _fused_forward(ids, emb_tbl, w1, b1, w2, b2,
                         use_bf16_mxu=use_bf16_mxu)            # (B*S, E)
    return out.reshape(B, S, E)


def init_params(key, vocab_size, embed_dim, hidden_dim):
    k0, k1, k2, k3, k4 = jax.random.split(key, 5)
    scale = 0.02
    return {
        "embedding": scale * jax.random.normal(k0, (vocab_size, embed_dim),
                                               jnp.float32),
        "w1": scale * jax.random.normal(k1, (embed_dim, hidden_dim),
                                        jnp.float32),
        "b1": scale * jax.random.normal(k2, (1, hidden_dim), jnp.float32),
        "w2": scale * jax.random.normal(k3, (hidden_dim, embed_dim),
                                        jnp.float32),
        "b2": scale * jax.random.normal(k4, (1, embed_dim), jnp.float32),
    }


def _reference(params, *xs):
    """Pure-JAX reference of the same forward (sanity check)."""
    def base(x):
        e = jnp.take(params["embedding"], x, axis=0)
        h = jnp.maximum(e @ params["w1"] + params["b1"][0], 0.0)
        return h @ params["w2"] + params["b2"][0]
    out = base(xs[0])
    for x in xs[1:]:
        if x is not None:
            out = out + base(x)
    return out


if __name__ == "__main__":
    vocab_size, embed_dim, hidden_dim = 100, 32, 64
    batch, seq = 2, 8

    key = jax.random.PRNGKey(0)
    kp, k0, k1, k2 = jax.random.split(key, 4)
    params = init_params(kp, vocab_size, embed_dim, hidden_dim)

    x0 = jax.random.randint(k0, (batch, seq), 0, vocab_size, jnp.int32)
    x1 = jax.random.randint(k1, (batch, seq), 0, vocab_size, jnp.int32)
    x2 = jax.random.randint(k2, (batch, seq), 0, vocab_size, jnp.int32)

    # Exact-numerics path (f32 MXU) vs the f32 reference.
    out_f32 = model_with_multiple_inputs(params, x0, x1, x2,
                                         use_bf16_mxu=False)
    out_f32 = jax.block_until_ready(out_f32)
    ref3 = _reference(params, x0, x1, x2)
    assert out_f32.shape == (batch, seq, embed_dim)
    assert jnp.allclose(out_f32, ref3, atol=1e-5, rtol=1e-5)

    # Single-input variant (x1 = x2 = None), f32 path.
    out_one = jax.block_until_ready(
        model_with_multiple_inputs(params, x0, use_bf16_mxu=False))
    assert jnp.allclose(out_one, _reference(params, x0), atol=1e-5, rtol=1e-5)

    # Default fast path: bf16 MXU inputs, f32 accumulation -> looser tolerance.
    out_bf16 = jax.block_until_ready(
        model_with_multiple_inputs(params, x0, x1, x2))
    assert jnp.allclose(out_bf16, ref3, atol=2e-3, rtol=2e-2)

    print("KERNEL_OK")
</pallas_src>

<mosaic_0001>
module attributes {stable_mosaic.version = 11 : i64} {
  func.func @_fused_embed_mlp_kernel(%arg0: i32, %arg1: memref<3x16xi32, #tpu.memory_space<smem>>, %arg2: memref<128x128xf32, #tpu.memory_space<vmem>>, %arg3: memref<128x128xf32, #tpu.memory_space<vmem>>, %arg4: memref<1x128xf32, #tpu.memory_space<vmem>>, %arg5: memref<128x128xf32, #tpu.memory_space<vmem>>, %arg6: memref<1x128xf32, #tpu.memory_space<vmem>>, %arg7: memref<16x128xf32, #tpu.memory_space<vmem>>, %arg8: memref<16x128xf32, #tpu.memory_space<vmem>>) attributes {dimension_semantics = [#tpu.dimension_semantics<parallel>], iteration_bounds = array<i64: 1>, scalar_prefetch = 1 : i64, scratch_operands = 1 : i64, tpu.core_type = #tpu.core_type<tc>, window_params = [{pipeline_mode = #tpu.pipeline_mode<synchronous>, transform_indices = @transform_0, window_bounds = array<i64: 128, 128>}, {pipeline_mode = #tpu.pipeline_mode<synchronous>, transform_indices = @transform_1, window_bounds = array<i64: 128, 128>}, {pipeline_mode = #tpu.pipeline_mode<synchronous>, transform_indices = @transform_2, window_bounds = array<i64: 1, 128>}, {pipeline_mode = #tpu.pipeline_mode<synchronous>, transform_indices = @transform_3, window_bounds = array<i64: 128, 128>}, {pipeline_mode = #tpu.pipeline_mode<synchronous>, transform_indices = @transform_4, window_bounds = array<i64: 1, 128>}, {transform_indices = @transform_5, window_bounds = array<i64: 16, 128>}]} {
    %c16_i32 = arith.constant 16 : i32
    %0 = arith.muli %arg0, %c16_i32 : i32
    %c0 = arith.constant 0 : index
    %c0_0 = arith.constant 0 : index
    %1 = vector.load %arg3[%c0, %c0_0] : memref<128x128xf32, #tpu.memory_space<vmem>>, vector<128x128xf32>
    %c0_1 = arith.constant 0 : index
    %c0_2 = arith.constant 0 : index
    %2 = vector.load %arg5[%c0_1, %c0_2] : memref<128x128xf32, #tpu.memory_space<vmem>>, vector<128x128xf32>
    %c0_3 = arith.constant 0 : index
    %c0_4 = arith.constant 0 : index
    %3 = vector.load %arg4[%c0_3, %c0_4] : memref<1x128xf32, #tpu.memory_space<vmem>>, vector<1x128xf32>
    %4 = vector.shape_cast %3 : vector<1x128xf32> to vector<1x128xf32>
    %5 = vector.broadcast %4 : vector<1x128xf32> to vector<16x128xf32>
    %cst = arith.constant 0.000000e+00 : f32
    %6 = vector.broadcast %cst : f32 to vector<16x128xf32>
    %c0_i32 = arith.constant 0 : i32
    %7 = arith.addi %0, %c0_i32 : i32
    %c0_5 = arith.constant 0 : index
    %8 = arith.index_cast %7 : i32 to index
    %9 = memref.load %arg1[%c0_5, %8] : memref<3x16xi32, #tpu.memory_space<smem>>
    %c0_i32_6 = arith.constant 0 : i32
    %10 = arith.maxsi %9, %c0_i32_6 : i32
    %c127_i32 = arith.constant 127 : i32
    %11 = arith.minsi %10, %c127_i32 : i32
    %12 = arith.index_cast %11 : i32 to index
    %c0_7 = arith.constant 0 : index
    %13 = vector.load %arg2[%12, %c0_7] : memref<128x128xf32, #tpu.memory_space<vmem>>, vector<1x128xf32>
    %14 = arith.index_cast %c0_i32 : i32 to index
    %c0_8 = arith.constant 0 : index
    %15 = vector.load %arg8[%14, %c0_8] : memref<16x128xf32, #tpu.memory_space<vmem>>, vector<1x128xf32>
    tpu.vector_store %arg8[%14, %c0_8], %13 {strides = array<i32>} : memref<16x128xf32, #tpu.memory_space<vmem>>, vector<1x128xf32>,
    %c1_i32 = arith.constant 1 : i32
    %16 = arith.addi %0, %c1_i32 : i32
    %c0_9 = arith.constant 0 : index
    %17 = arith.index_cast %16 : i32 to index
    %18 = memref.load %arg1[%c0_9, %17] : memref<3x16xi32, #tpu.memory_space<smem>>
    %c0_i32_10 = arith.constant 0 : i32
    %19 = arith.maxsi %18, %c0_i32_10 : i32
    %c127_i32_11 = arith.constant 127 : i32
    %20 = arith.minsi %19, %c127_i32_11 : i32
    %21 = arith.index_cast %20 : i32 to index
    %c0_12 = arith.constant 0 : index
    %22 = vector.load %arg2[%21, %c0_12] : memref<128x128xf32, #tpu.memory_space<vmem>>, vector<1x128xf32>
    %23 = arith.index_cast %c1_i32 : i32 to index
    %c0_13 = arith.constant 0 : index
    %24 = vector.load %arg8[%23, %c0_13] : memref<16x128xf32, #tpu.memory_space<vmem>>, vector<1x128xf32>
    tpu.vector_store %arg8[%23, %c0_13], %22 {strides = array<i32>} : memref<16x128xf32, #tpu.memory_space<vmem>>, vector<1x128xf32>,
    %c2_i32 = arith.constant 2 : i32
    %25 = arith.addi %0, %c2_i32 : i32
    %c0_14 = arith.constant 0 : index
    %26 = arith.index_cast %25 : i32 to index
    %27 = memref.load %arg1[%c0_14, %26] : memref<3x16xi32, #tpu.memory_space<smem>>
    %c0_i32_15 = arith.constant 0 : i32
    %28 = arith.maxsi %27, %c0_i32_15 : i32
    %c127_i32_16 = arith.constant 127 : i32
    %29 = arith.minsi %28, %c127_i32_16 : i32
    %30 = arith.index_cast %29 : i32 to index
    %c0_17 = arith.constant 0 : index
    %31 = vector.load %arg2[%30, %c0_17] : memref<128x128xf32, #tpu.memory_space<vmem>>, vector<1x128xf32>
    %32 = arith.index_cast %c2_i32 : i32 to index
    %c0_18 = arith.constant 0 : index
    %33 = vector.load %arg8[%32, %c0_18] : memref<16x128xf32, #tpu.memory_space<vmem>>, vector<1x128xf32>
    tpu.vector_store %arg8[%32, %c0_18], %31 {strides = array<i32>} : memref<16x128xf32, #tpu.memory_space<vmem>>, vector<1x128xf32>,
    %c3_i32 = arith.constant 3 : i32
    %34 = arith.addi %0, %c3_i32 : i32
    %c0_19 = arith.constant 0 : index
    %35 = arith.index_cast %34 : i32 to index
    %36 = memref.load %arg1[%c0_19, %35] : memref<3x16xi32, #tpu.memory_space<smem>>
    %c0_i32_20 = arith.constant 0 : i32
    %37 = arith.maxsi %36, %c0_i32_20 : i32
    %c127_i32_21 = arith.constant 127 : i32
    %38 = arith.minsi %37, %c127_i32_21 : i32
    %39 = arith.index_cast %38 : i32 to index
    %c0_22 = arith.constant 0 : index
    %40 = vector.load %arg2[%39, %c0_22] : memref<128x128xf32, #tpu.memory_space<vmem>>, vector<1x128xf32>
    %41 = arith.index_cast %c3_i32 : i32 to index
    %c0_23 = arith.constant 0 : index
    %42 = vector.load %arg8[%41, %c0_23] : memref<16x128xf32, #tpu.memory_space<vmem>>, vector<1x128xf32>
    tpu.vector_store %arg8[%41, %c0_23], %40 {strides = array<i32>} : memref<16x128xf32, #tpu.memory_space<vmem>>, vector<1x128xf32>,
    %c4_i32 = arith.constant 4 : i32
    %43 = arith.addi %0, %c4_i32 : i32
    %c0_24 = arith.constant 0 : index
    %44 = arith.index_cast %43 : i32 to index
    %45 = memref.load %arg1[%c0_24, %44] : memref<3x16xi32, #tpu.memory_space<smem>>
    %c0_i32_25 = arith.constant 0 : i32
    %46 = arith.maxsi %45, %c0_i32_25 : i32
    %c127_i32_26 = arith.constant 127 : i32
    %47 = arith.minsi %46, %c127_i32_26 : i32
    %48 = arith.index_cast %47 : i32 to index
    %c0_27 = arith.constant 0 : index
    %49 = vector.load %arg2[%48, %c0_27] : memref<128x128xf32, #tpu.memory_space<vmem>>, vector<1x128xf32>
    %50 = arith.index_cast %c4_i32 : i32 to index
    %c0_28 = arith.constant 0 : index
    %51 = vector.load %arg8[%50, %c0_28] : memref<16x128xf32, #tpu.memory_space<vmem>>, vector<1x128xf32>
    tpu.vector_store %arg8[%50, %c0_28], %49 {strides = array<i32>} : memref<16x128xf32, #tpu.memory_space<vmem>>, vector<1x128xf32>,
    %c5_i32 = arith.constant 5 : i32
    %52 = arith.addi %0, %c5_i32 : i32
    %c0_29 = arith.constant 0 : index
    %53 = arith.index_cast %52 : i32 to index
    %54 = memref.load %arg1[%c0_29, %53] : memref<3x16xi32, #tpu.memory_space<smem>>
    %c0_i32_30 = arith.constant 0 : i32
    %55 = arith.maxsi %54, %c0_i32_30 : i32
    %c127_i32_31 = arith.constant 127 : i32
    %56 = arith.minsi %55, %c127_i32_31 : i32
    %57 = arith.index_cast %56 : i32 to index
    %c0_32 = arith.constant 0 : index
    %58 = vector.load %arg2[%57, %c0_32] : memref<128x128xf32, #tpu.memory_space<vmem>>, vector<1x128xf32>
    %59 = arith.index_cast %c5_i32 : i32 to index
    %c0_33 = arith.constant 0 : index
    %60 = vector.load %arg8[%59, %c0_33] : memref<16x128xf32, #tpu.memory_space<vmem>>, vector<1x128xf32>
    tpu.vector_store %arg8[%59, %c0_33], %58 {strides = array<i32>} : memref<16x128xf32, #tpu.memory_space<vmem>>, vector<1x128xf32>,
    %c6_i32 = arith.constant 6 : i32
    %61 = arith.addi %0, %c6_i32 : i32
    %c0_34 = arith.constant 0 : index
    %62 = arith.index_cast %61 : i32 to index
    %63 = memref.load %arg1[%c0_34, %62] : memref<3x16xi32, #tpu.memory_space<smem>>
    %c0_i32_35 = arith.constant 0 : i32
    %64 = arith.maxsi %63, %c0_i32_35 : i32
    %c127_i32_36 = arith.constant 127 : i32
    %65 = arith.minsi %64, %c127_i32_36 : i32
    %66 = arith.index_cast %65 : i32 to index
    %c0_37 = arith.constant 0 : index
    %67 = vector.load %arg2[%66, %c0_37] : memref<128x128xf32, #tpu.memory_space<vmem>>, vector<1x128xf32>
    %68 = arith.index_cast %c6_i32 : i32 to index
    %c0_38 = arith.constant 0 : index
    %69 = vector.load %arg8[%68, %c0_38] : memref<16x128xf32, #tpu.memory_space<vmem>>, vector<1x128xf32>
    tpu.vector_store %arg8[%68, %c0_38], %67 {strides = array<i32>} : memref<16x128xf32, #tpu.memory_space<vmem>>, vector<1x128xf32>,
    %c7_i32 = arith.constant 7 : i32
    %70 = arith.addi %0, %c7_i32 : i32
    %c0_39 = arith.constant 0 : index
    %71 = arith.index_cast %70 : i32 to index
    %72 = memref.load %arg1[%c0_39, %71] : memref<3x16xi32, #tpu.memory_space<smem>>
    %c0_i32_40 = arith.constant 0 : i32
    %73 = arith.maxsi %72, %c0_i32_40 : i32
    %c127_i32_41 = arith.constant 127 : i32
    %74 = arith.minsi %73, %c127_i32_41 : i32
    %75 = arith.index_cast %74 : i32 to index
    %c0_42 = arith.constant 0 : index
    %76 = vector.load %arg2[%75, %c0_42] : memref<128x128xf32, #tpu.memory_space<vmem>>, vector<1x128xf32>
    %77 = arith.index_cast %c7_i32 : i32 to index
    %c0_43 = arith.constant 0 : index
    %78 = vector.load %arg8[%77, %c0_43] : memref<16x128xf32, #tpu.memory_space<vmem>>, vector<1x128xf32>
    tpu.vector_store %arg8[%77, %c0_43], %76 {strides = array<i32>} : memref<16x128xf32, #tpu.memory_space<vmem>>, vector<1x128xf32>,
    %c8_i32 = arith.constant 8 : i32
    %79 = arith.addi %0, %c8_i32 : i32
    %c0_44 = arith.constant 0 : index
    %80 = arith.index_cast %79 : i32 to index
    %81 = memref.load %arg1[%c0_44, %80] : memref<3x16xi32, #tpu.memory_space<smem>>
    %c0_i32_45 = arith.constant 0 : i32
    %82 = arith.maxsi %81, %c0_i32_45 : i32
    %c127_i32_46 = arith.constant 127 : i32
    %83 = arith.minsi %82, %c127_i32_46 : i32
    %84 = arith.index_cast %83 : i32 to index
    %c0_47 = arith.constant 0 : index
    %85 = vector.load %arg2[%84, %c0_47] : memref<128x128xf32, #tpu.memory_space<vmem>>, vector<1x128xf32>
    %86 = arith.index_cast %c8_i32 : i32 to index
    %c0_48 = arith.constant 0 : index
    %87 = vector.load %arg8[%86, %c0_48] : memref<16x128xf32, #tpu.memory_space<vmem>>, vector<1x128xf32>
    tpu.vector_store %arg8[%86, %c0_48], %85 {strides = array<i32>} : memref<16x128xf32, #tpu.memory_space<vmem>>, vector<1x128xf32>,
    %c9_i32 = arith.constant 9 : i32
    %88 = arith.addi %0, %c9_i32 : i32
    %c0_49 = arith.constant 0 : index
    %89 = arith.index_cast %88 : i32 to index
    %90 = memref.load %arg1[%c0_49, %89] : memref<3x16xi32, #tpu.memory_space<smem>>
    %c0_i32_50 = arith.constant 0 : i32
    %91 = arith.maxsi %90, %c0_i32_50 : i32
    %c127_i32_51 = arith.constant 127 : i32
    %92 = arith.minsi %91, %c127_i32_51 : i32
    %93 = arith.index_cast %92 : i32 to index
    %c0_52 = arith.constant 0 : index
    %94 = vector.load %arg2[%93, %c0_52] : memref<128x128xf32, #tpu.memory_space<vmem>>, vector<1x128xf32>
    %95 = arith.index_cast %c9_i32 : i32 to index
    %c0_53 = arith.constant 0 : index
    %96 = vector.load %arg8[%95, %c0_53] : memref<16x128xf32, #tpu.memory_space<vmem>>, vector<1x128xf32>
    tpu.vector_store %arg8[%95, %c0_53], %94 {strides = array<i32>} : memref<16x128xf32, #tpu.memory_space<vmem>>, vector<1x128xf32>,
    %c10_i32 = arith.constant 10 : i32
    %97 = arith.addi %0, %c10_i32 : i32
    %c0_54 = arith.constant 0 : index
    %98 = arith.index_cast %97 : i32 to index
    %99 = memref.load %arg1[%c0_54, %98] : memref<3x16xi32, #tpu.memory_space<smem>>
    %c0_i32_55 = arith.constant 0 : i32
    %100 = arith.maxsi %99, %c0_i32_55 : i32
    %c127_i32_56 = arith.constant 127 : i32
    %101 = arith.minsi %100, %c127_i32_56 : i32
    %102 = arith.index_cast %101 : i32 to index
    %c0_57 = arith.constant 0 : index
    %103 = vector.load %arg2[%102, %c0_57] : memref<128x128xf32, #tpu.memory_space<vmem>>, vector<1x128xf32>
    %104 = arith.index_cast %c10_i32 : i32 to index
    %c0_58 = arith.constant 0 : index
    %105 = vector.load %arg8[%104, %c0_58] : memref<16x128xf32, #tpu.memory_space<vmem>>, vector<1x128xf32>
    tpu.vector_store %arg8[%104, %c0_58], %103 {strides = array<i32>} : memref<16x128xf32, #tpu.memory_space<vmem>>, vector<1x128xf32>,
    %c11_i32 = arith.constant 11 : i32
    %106 = arith.addi %0, %c11_i32 : i32
    %c0_59 = arith.constant 0 : index
    %107 = arith.index_cast %106 : i32 to index
    %108 = memref.load %arg1[%c0_59, %107] : memref<3x16xi32, #tpu.memory_space<smem>>
    %c0_i32_60 = arith.constant 0 : i32
    %109 = arith.maxsi %108, %c0_i32_60 : i32
    %c127_i32_61 = arith.constant 127 : i32
    %110 = arith.minsi %109, %c127_i32_61 : i32
    %111 = arith.index_cast %110 : i32 to index
    %c0_62 = arith.constant 0 : index
    %112 = vector.load %arg2[%111, %c0_62] : memref<128x128xf32, #tpu.memory_space<vmem>>, vector<1x128xf32>
    %113 = arith.index_cast %c11_i32 : i32 to index
    %c0_63 = arith.constant 0 : index
    %114 = vector.load %arg8[%113, %c0_63] : memref<16x128xf32, #tpu.memory_space<vmem>>, vector<1x128xf32>
    tpu.vector_store %arg8[%113, %c0_63], %112 {strides = array<i32>} : memref<16x128xf32, #tpu.memory_space<vmem>>, vector<1x128xf32>,
    %c12_i32 = arith.constant 12 : i32
    %115 = arith.addi %0, %c12_i32 : i32
    %c0_64 = arith.constant 0 : index
    %116 = arith.index_cast %115 : i32 to index
    %117 = memref.load %arg1[%c0_64, %116] : memref<3x16xi32, #tpu.memory_space<smem>>
    %c0_i32_65 = arith.constant 0 : i32
    %118 = arith.maxsi %117, %c0_i32_65 : i32
    %c127_i32_66 = arith.constant 127 : i32
    %119 = arith.minsi %118, %c127_i32_66 : i32
    %120 = arith.index_cast %119 : i32 to index
    %c0_67 = arith.constant 0 : index
    %121 = vector.load %arg2[%120, %c0_67] : memref<128x128xf32, #tpu.memory_space<vmem>>, vector<1x128xf32>
    %122 = arith.index_cast %c12_i32 : i32 to index
    %c0_68 = arith.constant 0 : index
    %123 = vector.load %arg8[%122, %c0_68] : memref<16x128xf32, #tpu.memory_space<vmem>>, vector<1x128xf32>
    tpu.vector_store %arg8[%122, %c0_68], %121 {strides = array<i32>} : memref<16x128xf32, #tpu.memory_space<vmem>>, vector<1x128xf32>,
    %c13_i32 = arith.constant 13 : i32
    %124 = arith.addi %0, %c13_i32 : i32
    %c0_69 = arith.constant 0 : index
    %125 = arith.index_cast %124 : i32 to index
    %126 = memref.load %arg1[%c0_69, %125] : memref<3x16xi32, #tpu.memory_space<smem>>
    %c0_i32_70 = arith.constant 0 : i32
    %127 = arith.maxsi %126, %c0_i32_70 : i32
    %c127_i32_71 = arith.constant 127 : i32
    %128 = arith.minsi %127, %c127_i32_71 : i32
    %129 = arith.index_cast %128 : i32 to index
    %c0_72 = arith.constant 0 : index
    %130 = vector.load %arg2[%129, %c0_72] : memref<128x128xf32, #tpu.memory_space<vmem>>, vector<1x128xf32>
    %131 = arith.index_cast %c13_i32 : i32 to index
    %c0_73 = arith.constant 0 : index
    %132 = vector.load %arg8[%131, %c0_73] : memref<16x128xf32, #tpu.memory_space<vmem>>, vector<1x128xf32>
    tpu.vector_store %arg8[%131, %c0_73], %130 {strides = array<i32>} : memref<16x128xf32, #tpu.memory_space<vmem>>, vector<1x128xf32>,
    %c14_i32 = arith.constant 14 : i32
    %133 = arith.addi %0, %c14_i32 : i32
    %c0_74 = arith.constant 0 : index
    %134 = arith.index_cast %133 : i32 to index
    %135 = memref.load %arg1[%c0_74, %134] : memref<3x16xi32, #tpu.memory_space<smem>>
    %c0_i32_75 = arith.constant 0 : i32
    %136 = arith.maxsi %135, %c0_i32_75 : i32
    %c127_i32_76 = arith.constant 127 : i32
    %137 = arith.minsi %136, %c127_i32_76 : i32
    %138 = arith.index_cast %137 : i32 to index
    %c0_77 = arith.constant 0 : index
    %139 = vector.load %arg2[%138, %c0_77] : memref<128x128xf32, #tpu.memory_space<vmem>>, vector<1x128xf32>
    %140 = arith.index_cast %c14_i32 : i32 to index
    %c0_78 = arith.constant 0 : index
    %141 = vector.load %arg8[%140, %c0_78] : memref<16x128xf32, #tpu.memory_space<vmem>>, vector<1x128xf32>
    tpu.vector_store %arg8[%140, %c0_78], %139 {strides = array<i32>} : memref<16x128xf32, #tpu.memory_space<vmem>>, vector<1x128xf32>,
    %c15_i32 = arith.constant 15 : i32
    %142 = arith.addi %0, %c15_i32 : i32
    %c0_79 = arith.constant 0 : index
    %143 = arith.index_cast %142 : i32 to index
    %144 = memref.load %arg1[%c0_79, %143] : memref<3x16xi32, #tpu.memory_space<smem>>
    %c0_i32_80 = arith.constant 0 : i32
    %145 = arith.maxsi %144, %c0_i32_80 : i32
    %c127_i32_81 = arith.constant 127 : i32
    %146 = arith.minsi %145, %c127_i32_81 : i32
    %147 = arith.index_cast %146 : i32 to index
    %c0_82 = arith.constant 0 : index
    %148 = vector.load %arg2[%147, %c0_82] : memref<128x128xf32, #tpu.memory_space<vmem>>, vector<1x128xf32>
    %149 = arith.index_cast %c15_i32 : i32 to index
    %c0_83 = arith.constant 0 : index
    %150 = vector.load %arg8[%149, %c0_83] : memref<16x128xf32, #tpu.memory_space<vmem>>, vector<1x128xf32>
    tpu.vector_store %arg8[%149, %c0_83], %148 {strides = array<i32>} : memref<16x128xf32, #tpu.memory_space<vmem>>, vector<1x128xf32>,
    %c16_i32_84 = arith.constant 16 : i32
    %c0_85 = arith.constant 0 : index
    %c0_86 = arith.constant 0 : index
    %151 = vector.load %arg8[%c0_85, %c0_86] : memref<16x128xf32, #tpu.memory_space<vmem>>, vector<16x128xf32>
    %cst_87 = arith.constant dense<0.000000e+00> : vector<16x128xf32>
    %152 = tpu.matmul %151, %1, %cst_87 {dimension_numbers = #tpu.dot_dimension_numbers<[1], [0], [0], [1], [0, 0, 1, 1], [], []>} : vector<16x128xf32>, vector<128x128xf32>, vector<16x128xf32> -> vector<16x128xf32>
    %153 = arith.addf %152, %5 : vector<16x128xf32>
    %cst_88 = arith.constant 0.000000e+00 : f32
    %154 = vector.broadcast %cst_88 : f32 to vector<16x128xf32>
    %155 = arith.maximumf %153, %154 : vector<16x128xf32>
    %156 = arith.addf %6, %155 : vector<16x128xf32>
    %c0_i32_89 = arith.constant 0 : i32
    %157 = arith.addi %0, %c0_i32_89 : i32
    %c1 = arith.constant 1 : index
    %158 = arith.index_cast %157 : i32 to index
    %159 = memref.load %arg1[%c1, %158] : memref<3x16xi32, #tpu.memory_space<smem>>
    %c0_i32_90 = arith.constant 0 : i32
    %160 = arith.maxsi %159, %c0_i32_90 : i32
    %c127_i32_91 = arith.constant 127 : i32
    %161 = arith.minsi %160, %c127_i32_91 : i32
    %162 = arith.index_cast %161 : i32 to index
    %c0_92 = arith.constant 0 : index
    %163 = vector.load %arg2[%162, %c0_92] : memref<128x128xf32, #tpu.memory_space<vmem>>, vector<1x128xf32>
    %164 = arith.index_cast %c0_i32_89 : i32 to index
    %c0_93 = arith.constant 0 : index
    %165 = vector.load %arg8[%164, %c0_93] : memref<16x128xf32, #tpu.memory_space<vmem>>, vector<1x128xf32>
    tpu.vector_store %arg8[%164, %c0_93], %163 {strides = array<i32>} : memref<16x128xf32, #tpu.memory_space<vmem>>, vector<1x128xf32>,
    %c1_i32_94 = arith.constant 1 : i32
    %166 = arith.addi %0, %c1_i32_94 : i32
    %c1_95 = arith.constant 1 : index
    %167 = arith.index_cast %166 : i32 to index
    %168 = memref.load %arg1[%c1_95, %167] : memref<3x16xi32, #tpu.memory_space<smem>>
    %c0_i32_96 = arith.constant 0 : i32
    %169 = arith.maxsi %168, %c0_i32_96 : i32
    %c127_i32_97 = arith.constant 127 : i32
    %170 = arith.minsi %169, %c127_i32_97 : i32
    %171 = arith.index_cast %170 : i32 to index
    %c0_98 = arith.constant 0 : index
    %172 = vector.load %arg2[%171, %c0_98] : memref<128x128xf32, #tpu.memory_space<vmem>>, vector<1x128xf32>
    %173 = arith.index_cast %c1_i32_94 : i32 to index
    %c0_99 = arith.constant 0 : index
    %174 = vector.load %arg8[%173, %c0_99] : memref<16x128xf32, #tpu.memory_space<vmem>>, vector<1x128xf32>
    tpu.vector_store %arg8[%173, %c0_99], %172 {strides = array<i32>} : memref<16x128xf32, #tpu.memory_space<vmem>>, vector<1x128xf32>,
    %c2_i32_100 = arith.constant 2 : i32
    %175 = arith.addi %0, %c2_i32_100 : i32
    %c1_101 = arith.constant 1 : index
    %176 = arith.index_cast %175 : i32 to index
    %177 = memref.load %arg1[%c1_101, %176] : memref<3x16xi32, #tpu.memory_space<smem>>
    %c0_i32_102 = arith.constant 0 : i32
    %178 = arith.maxsi %177, %c0_i32_102 : i32
    %c127_i32_103 = arith.constant 127 : i32
    %179 = arith.minsi %178, %c127_i32_103 : i32
    %180 = arith.index_cast %179 : i32 to index
    %c0_104 = arith.constant 0 : index
    %181 = vector.load %arg2[%180, %c0_104] : memref<128x128xf32, #tpu.memory_space<vmem>>, vector<1x128xf32>
    %182 = arith.index_cast %c2_i32_100 : i32 to index
    %c0_105 = arith.constant 0 : index
    %183 = vector.load %arg8[%182, %c0_105] : memref<16x128xf32, #tpu.memory_space<vmem>>, vector<1x128xf32>
    tpu.vector_store %arg8[%182, %c0_105], %181 {strides = array<i32>} : memref<16x128xf32, #tpu.memory_space<vmem>>, vector<1x128xf32>,
    %c3_i32_106 = arith.constant 3 : i32
    %184 = arith.addi %0, %c3_i32_106 : i32
    %c1_107 = arith.constant 1 : index
    %185 = arith.index_cast %184 : i32 to index
    %186 = memref.load %arg1[%c1_107, %185] : memref<3x16xi32, #tpu.memory_space<smem>>
    %c0_i32_108 = arith.constant 0 : i32
    %187 = arith.maxsi %186, %c0_i32_108 : i32
    %c127_i32_109 = arith.constant 127 : i32
    %188 = arith.minsi %187, %c127_i32_109 : i32
    %189 = arith.index_cast %188 : i32 to index
    %c0_110 = arith.constant 0 : index
    %190 = vector.load %arg2[%189, %c0_110] : memref<128x128xf32, #tpu.memory_space<vmem>>, vector<1x128xf32>
    %191 = arith.index_cast %c3_i32_106 : i32 to index
    %c0_111 = arith.constant 0 : index
    %192 = vector.load %arg8[%191, %c0_111] : memref<16x128xf32, #tpu.memory_space<vmem>>, vector<1x128xf32>
    tpu.vector_store %arg8[%191, %c0_111], %190 {strides = array<i32>} : memref<16x128xf32, #tpu.memory_space<vmem>>, vector<1x128xf32>,
    %c4_i32_112 = arith.constant 4 : i32
    %193 = arith.addi %0, %c4_i32_112 : i32
    %c1_113 = arith.constant 1 : index
    %194 = arith.index_cast %193 : i32 to index
    %195 = memref.load %arg1[%c1_113, %194] : memref<3x16xi32, #tpu.memory_space<smem>>
    %c0_i32_114 = arith.constant 0 : i32
    %196 = arith.maxsi %195, %c0_i32_114 : i32
    %c127_i32_115 = arith.constant 127 : i32
    %197 = arith.minsi %196, %c127_i32_115 : i32
    %198 = arith.index_cast %197 : i32 to index
    %c0_116 = arith.constant 0 : index
    %199 = vector.load %arg2[%198, %c0_116] : memref<128x128xf32, #tpu.memory_space<vmem>>, vector<1x128xf32>
    %200 = arith.index_cast %c4_i32_112 : i32 to index
    %c0_117 = arith.constant 0 : index
    %201 = vector.load %arg8[%200, %c0_117] : memref<16x128xf32, #tpu.memory_space<vmem>>, vector<1x128xf32>
    tpu.vector_store %arg8[%200, %c0_117], %199 {strides = array<i32>} : memref<16x128xf32, #tpu.memory_space<vmem>>, vector<1x128xf32>,
    %c5_i32_118 = arith.constant 5 : i32
    %202 = arith.addi %0, %c5_i32_118 : i32
    %c1_119 = arith.constant 1 : index
    %203 = arith.index_cast %202 : i32 to index
    %204 = memref.load %arg1[%c1_119, %203] : memref<3x16xi32, #tpu.memory_space<smem>>
    %c0_i32_120 = arith.constant 0 : i32
    %205 = arith.maxsi %204, %c0_i32_120 : i32
    %c127_i32_121 = arith.constant 127 : i32
    %206 = arith.minsi %205, %c127_i32_121 : i32
    %207 = arith.index_cast %206 : i32 to index
    %c0_122 = arith.constant 0 : index
    %208 = vector.load %arg2[%207, %c0_122] : memref<128x128xf32, #tpu.memory_space<vmem>>, vector<1x128xf32>
    %209 = arith.index_cast %c5_i32_118 : i32 to index
    %c0_123 = arith.constant 0 : index
    %210 = vector.load %arg8[%209, %c0_123] : memref<16x128xf32, #tpu.memory_space<vmem>>, vector<1x128xf32>
    tpu.vector_store %arg8[%209, %c0_123], %208 {strides = array<i32>} : memref<16x128xf32, #tpu.memory_space<vmem>>, vector<1x128xf32>,
    %c6_i32_124 = arith.constant 6 : i32
    %211 = arith.addi %0, %c6_i32_124 : i32
    %c1_125 = arith.constant 1 : index
    %212 = arith.index_cast %211 : i32 to index
    %213 = memref.load %arg1[%c1_125, %212] : memref<3x16xi32, #tpu.memory_space<smem>>
    %c0_i32_126 = arith.constant 0 : i32
    %214 = arith.maxsi %213, %c0_i32_126 : i32
    %c127_i32_127 = arith.constant 127 : i32
    %215 = arith.minsi %214, %c127_i32_127 : i32
    %216 = arith.index_cast %215 : i32 to index
    %c0_128 = arith.constant 0 : index
    %217 = vector.load %arg2[%216, %c0_128] : memref<128x128xf32, #tpu.memory_space<vmem>>, vector<1x128xf32>
    %218 = arith.index_cast %c6_i32_124 : i32 to index
    %c0_129 = arith.constant 0 : index
    %219 = vector.load %arg8[%218, %c0_129] : memref<16x128xf32, #tpu.memory_space<vmem>>, vector<1x128xf32>
    tpu.vector_store %arg8[%218, %c0_129], %217 {strides = array<i32>} : memref<16x128xf32, #tpu.memory_space<vmem>>, vector<1x128xf32>,
    %c7_i32_130 = arith.constant 7 : i32
    %220 = arith.addi %0, %c7_i32_130 : i32
    %c1_131 = arith.constant 1 : index
    %221 = arith.index_cast %220 : i32 to index
    %222 = memref.load %arg1[%c1_131, %221] : memref<3x16xi32, #tpu.memory_space<smem>>
    %c0_i32_132 = arith.constant 0 : i32
    %223 = arith.maxsi %222, %c0_i32_132 : i32
    %c127_i32_133 = arith.constant 127 : i32
    %224 = arith.minsi %223, %c127_i32_133 : i32
    %225 = arith.index_cast %224 : i32 to index
    %c0_134 = arith.constant 0 : index
    %226 = vector.load %arg2[%225, %c0_134] : memref<128x128xf32, #tpu.memory_space<vmem>>, vector<1x128xf32>
    %227 = arith.index_cast %c7_i32_130 : i32 to index
    %c0_135 = arith.constant 0 : index
    %228 = vector.load %arg8[%227, %c0_135] : memref<16x128xf32, #tpu.memory_space<vmem>>, vector<1x128xf32>
    tpu.vector_store %arg8[%227, %c0_135], %226 {strides = array<i32>} : memref<16x128xf32, #tpu.memory_space<vmem>>, vector<1x128xf32>,
    %c8_i32_136 = arith.constant 8 : i32
    %229 = arith.addi %0, %c8_i32_136 : i32
    %c1_137 = arith.constant 1 : index
    %230 = arith.index_cast %229 : i32 to index
    %231 = memref.load %arg1[%c1_137, %230] : memref<3x16xi32, #tpu.memory_space<smem>>
    %c0_i32_138 = arith.constant 0 : i32
    %232 = arith.maxsi %231, %c0_i32_138 : i32
    %c127_i32_139 = arith.constant 127 : i32
    %233 = arith.minsi %232, %c127_i32_139 : i32
    %234 = arith.index_cast %233 : i32 to index
    %c0_140 = arith.constant 0 : index
    %235 = vector.load %arg2[%234, %c0_140] : memref<128x128xf32, #tpu.memory_space<vmem>>, vector<1x128xf32>
    %236 = arith.index_cast %c8_i32_136 : i32 to index
    %c0_141 = arith.constant 0 : index
    %237 = vector.load %arg8[%236, %c0_141] : memref<16x128xf32, #tpu.memory_space<vmem>>, vector<1x128xf32>
    tpu.vector_store %arg8[%236, %c0_141], %235 {strides = array<i32>} : memref<16x128xf32, #tpu.memory_space<vmem>>, vector<1x128xf32>,
    %c9_i32_142 = arith.constant 9 : i32
    %238 = arith.addi %0, %c9_i32_142 : i32
    %c1_143 = arith.constant 1 : index
    %239 = arith.index_cast %238 : i32 to index
    %240 = memref.load %arg1[%c1_143, %239] : memref<3x16xi32, #tpu.memory_space<smem>>
    %c0_i32_144 = arith.constant 0 : i32
    %241 = arith.maxsi %240, %c0_i32_144 : i32
    %c127_i32_145 = arith.constant 127 : i32
    %242 = arith.minsi %241, %c127_i32_145 : i32
    %243 = arith.index_cast %242 : i32 to index
    %c0_146 = arith.constant 0 : index
    %244 = vector.load %arg2[%243, %c0_146] : memref<128x128xf32, #tpu.memory_space<vmem>>, vector<1x128xf32>
    %245 = arith.index_cast %c9_i32_142 : i32 to index
    %c0_147 = arith.constant 0 : index
    %246 = vector.load %arg8[%245, %c0_147] : memref<16x128xf32, #tpu.memory_space<vmem>>, vector<1x128xf32>
    tpu.vector_store %arg8[%245, %c0_147], %244 {strides = array<i32>} : memref<16x128xf32, #tpu.memory_space<vmem>>, vector<1x128xf32>,
    %c10_i32_148 = arith.constant 10 : i32
    %247 = arith.addi %0, %c10_i32_148 : i32
    %c1_149 = arith.constant 1 : index
    %248 = arith.index_cast %247 : i32 to index
    %249 = memref.load %arg1[%c1_149, %248] : memref<3x16xi32, #tpu.memory_space<smem>>
    %c0_i32_150 = arith.constant 0 : i32
    %250 = arith.maxsi %249, %c0_i32_150 : i32
    %c127_i32_151 = arith.constant 127 : i32
    %251 = arith.minsi %250, %c127_i32_151 : i32
    %252 = arith.index_cast %251 : i32 to index
    %c0_152 = arith.constant 0 : index
    %253 = vector.load %arg2[%252, %c0_152] : memref<128x128xf32, #tpu.memory_space<vmem>>, vector<1x128xf32>
    %254 = arith.index_cast %c10_i32_148 : i32 to index
    %c0_153 = arith.constant 0 : index
    %255 = vector.load %arg8[%254, %c0_153] : memref<16x128xf32, #tpu.memory_space<vmem>>, vector<1x128xf32>
    tpu.vector_store %arg8[%254, %c0_153], %253 {strides = array<i32>} : memref<16x128xf32, #tpu.memory_space<vmem>>, vector<1x128xf32>,
    %c11_i32_154 = arith.constant 11 : i32
    %256 = arith.addi %0, %c11_i32_154 : i32
    %c1_155 = arith.constant 1 : index
    %257 = arith.index_cast %256 : i32 to index
    %258 = memref.load %arg1[%c1_155, %257] : memref<3x16xi32, #tpu.memory_space<smem>>
    %c0_i32_156 = arith.constant 0 : i32
    %259 = arith.maxsi %258, %c0_i32_156 : i32
    %c127_i32_157 = arith.constant 127 : i32
    %260 = arith.minsi %259, %c127_i32_157 : i32
    %261 = arith.index_cast %260 : i32 to index
    %c0_158 = arith.constant 0 : index
    %262 = vector.load %arg2[%261, %c0_158] : memref<128x128xf32, #tpu.memory_space<vmem>>, vector<1x128xf32>
    %263 = arith.index_cast %c11_i32_154 : i32 to index
    %c0_159 = arith.constant 0 : index
    %264 = vector.load %arg8[%263, %c0_159] : memref<16x128xf32, #tpu.memory_space<vmem>>, vector<1x128xf32>
    tpu.vector_store %arg8[%263, %c0_159], %262 {strides = array<i32>} : memref<16x128xf32, #tpu.memory_space<vmem>>, vector<1x128xf32>,
    %c12_i32_160 = arith.constant 12 : i32
    %265 = arith.addi %0, %c12_i32_160 : i32
    %c1_161 = arith.constant 1 : index
    %266 = arith.index_cast %265 : i32 to index
    %267 = memref.load %arg1[%c1_161, %266] : memref<3x16xi32, #tpu.memory_space<smem>>
    %c0_i32_162 = arith.constant 0 : i32
    %268 = arith.maxsi %267, %c0_i32_162 : i32
    %c127_i32_163 = arith.constant 127 : i32
    %269 = arith.minsi %268, %c127_i32_163 : i32
    %270 = arith.index_cast %269 : i32 to index
    %c0_164 = arith.constant 0 : index
    %271 = vector.load %arg2[%270, %c0_164] : memref<128x128xf32, #tpu.memory_space<vmem>>, vector<1x128xf32>
    %272 = arith.index_cast %c12_i32_160 : i32 to index
    %c0_165 = arith.constant 0 : index
    %273 = vector.load %arg8[%272, %c0_165] : memref<16x128xf32, #tpu.memory_space<vmem>>, vector<1x128xf32>
    tpu.vector_store %arg8[%272, %c0_165], %271 {strides = array<i32>} : memref<16x128xf32, #tpu.memory_space<vmem>>, vector<1x128xf32>,
    %c13_i32_166 = arith.constant 13 : i32
    %274 = arith.addi %0, %c13_i32_166 : i32
    %c1_167 = arith.constant 1 : index
    %275 = arith.index_cast %274 : i32 to index
    %276 = memref.load %arg1[%c1_167, %275] : memref<3x16xi32, #tpu.memory_space<smem>>
    %c0_i32_168 = arith.constant 0 : i32
    %277 = arith.maxsi %276, %c0_i32_168 : i32
    %c127_i32_169 = arith.constant 127 : i32
    %278 = arith.minsi %277, %c127_i32_169 : i32
    %279 = arith.index_cast %278 : i32 to index
    %c0_170 = arith.constant 0 : index
    %280 = vector.load %arg2[%279, %c0_170] : memref<128x128xf32, #tpu.memory_space<vmem>>, vector<1x128xf32>
    %281 = arith.index_cast %c13_i32_166 : i32 to index
    %c0_171 = arith.constant 0 : index
    %282 = vector.load %arg8[%281, %c0_171] : memref<16x128xf32, #tpu.memory_space<vmem>>, vector<1x128xf32>
    tpu.vector_store %arg8[%281, %c0_171], %280 {strides = array<i32>} : memref<16x128xf32, #tpu.memory_space<vmem>>, vector<1x128xf32>,
    %c14_i32_172 = arith.constant 14 : i32
    %283 = arith.addi %0, %c14_i32_172 : i32
    %c1_173 = arith.constant 1 : index
    %284 = arith.index_cast %283 : i32 to index
    %285 = memref.load %arg1[%c1_173, %284] : memref<3x16xi32, #tpu.memory_space<smem>>
    %c0_i32_174 = arith.constant 0 : i32
    %286 = arith.maxsi %285, %c0_i32_174 : i32
    %c127_i32_175 = arith.constant 127 : i32
    %287 = arith.minsi %286, %c127_i32_175 : i32
    %288 = arith.index_cast %287 : i32 to index
    %c0_176 = arith.constant 0 : index
    %289 = vector.load %arg2[%288, %c0_176] : memref<128x128xf32, #tpu.memory_space<vmem>>, vector<1x128xf32>
    %290 = arith.index_cast %c14_i32_172 : i32 to index
    %c0_177 = arith.constant 0 : index
    %291 = vector.load %arg8[%290, %c0_177] : memref<16x128xf32, #tpu.memory_space<vmem>>, vector<1x128xf32>
    tpu.vector_store %arg8[%290, %c0_177], %289 {strides = array<i32>} : memref<16x128xf32, #tpu.memory_space<vmem>>, vector<1x128xf32>,
    %c15_i32_178 = arith.constant 15 : i32
    %292 = arith.addi %0, %c15_i32_178 : i32
    %c1_179 = arith.constant 1 : index
    %293 = arith.index_cast %292 : i32 to index
    %294 = memref.load %arg1[%c1_179, %293] : memref<3x16xi32, #tpu.memory_space<smem>>
    %c0_i32_180 = arith.constant 0 : i32
    %295 = arith.maxsi %294, %c0_i32_180 : i32
    %c127_i32_181 = arith.constant 127 : i32
    %296 = arith.minsi %295, %c127_i32_181 : i32
    %297 = arith.index_cast %296 : i32 to index
    %c0_182 = arith.constant 0 : index
    %298 = vector.load %arg2[%297, %c0_182] : memref<128x128xf32, #tpu.memory_space<vmem>>, vector<1x128xf32>
    %299 = arith.index_cast %c15_i32_178 : i32 to index
    %c0_183 = arith.constant 0 : index
    %300 = vector.load %arg8[%299, %c0_183] : memref<16x128xf32, #tpu.memory_space<vmem>>, vector<1x128xf32>
    tpu.vector_store %arg8[%299, %c0_183], %298 {strides = array<i32>} : memref<16x128xf32, #tpu.memory_space<vmem>>, vector<1x128xf32>,
    %c16_i32_184 = arith.constant 16 : i32
    %c0_185 = arith.constant 0 : index
    %c0_186 = arith.constant 0 : index
    %301 = vector.load %arg8[%c0_185, %c0_186] : memref<16x128xf32, #tpu.memory_space<vmem>>, vector<16x128xf32>
    %cst_187 = arith.constant dense<0.000000e+00> : vector<16x128xf32>
    %302 = tpu.matmul %301, %1, %cst_187 {dimension_numbers = #tpu.dot_dimension_numbers<[1], [0], [0], [1], [0, 0, 1, 1], [], []>} : vector<16x128xf32>, vector<128x128xf32>, vector<16x128xf32> -> vector<16x128xf32>
    %303 = arith.addf %302, %5 : vector<16x128xf32>
    %cst_188 = arith.constant 0.000000e+00 : f32
    %304 = vector.broadcast %cst_188 : f32 to vector<16x128xf32>
    %305 = arith.maximumf %303, %304 : vector<16x128xf32>
    %306 = arith.addf %156, %305 : vector<16x128xf32>
    %c0_i32_189 = arith.constant 0 : i32
    %307 = arith.addi %0, %c0_i32_189 : i32
    %c2 = arith.constant 2 : index
    %308 = arith.index_cast %307 : i32 to index
    %309 = memref.load %arg1[%c2, %308] : memref<3x16xi32, #tpu.memory_space<smem>>
    %c0_i32_190 = arith.constant 0 : i32
    %310 = arith.maxsi %309, %c0_i32_190 : i32
    %c127_i32_191 = arith.constant 127 : i32
    %311 = arith.minsi %310, %c127_i32_191 : i32
    %312 = arith.index_cast %311 : i32 to index
    %c0_192 = arith.constant 0 : index
    %313 = vector.load %arg2[%312, %c0_192] : memref<128x128xf32, #tpu.memory_space<vmem>>, vector<1x128xf32>
    %314 = arith.index_cast %c0_i32_189 : i32 to index
    %c0_193 = arith.constant 0 : index
    %315 = vector.load %arg8[%314, %c0_193] : memref<16x128xf32, #tpu.memory_space<vmem>>, vector<1x128xf32>
    tpu.vector_store %arg8[%314, %c0_193], %313 {strides = array<i32>} : memref<16x128xf32, #tpu.memory_space<vmem>>, vector<1x128xf32>,
    %c1_i32_194 = arith.constant 1 : i32
    %316 = arith.addi %0, %c1_i32_194 : i32
    %c2_195 = arith.constant 2 : index
    %317 = arith.index_cast %316 : i32 to index
    %318 = memref.load %arg1[%c2_195, %317] : memref<3x16xi32, #tpu.memory_space<smem>>
    %c0_i32_196 = arith.constant 0 : i32
    %319 = arith.maxsi %318, %c0_i32_196 : i32
    %c127_i32_197 = arith.constant 127 : i32
    %320 = arith.minsi %319, %c127_i32_197 : i32
    %321 = arith.index_cast %320 : i32 to index
    %c0_198 = arith.constant 0 : index
    %322 = vector.load %arg2[%321, %c0_198] : memref<128x128xf32, #tpu.memory_space<vmem>>, vector<1x128xf32>
    %323 = arith.index_cast %c1_i32_194 : i32 to index
    %c0_199 = arith.constant 0 : index
    %324 = vector.load %arg8[%323, %c0_199] : memref<16x128xf32, #tpu.memory_space<vmem>>, vector<1x128xf32>
    tpu.vector_store %arg8[%323, %c0_199], %322 {strides = array<i32>} : memref<16x128xf32, #tpu.memory_space<vmem>>, vector<1x128xf32>,
    %c2_i32_200 = arith.constant 2 : i32
    %325 = arith.addi %0, %c2_i32_200 : i32
    %c2_201 = arith.constant 2 : index
    %326 = arith.index_cast %325 : i32 to index
    %327 = memref.load %arg1[%c2_201, %326] : memref<3x16xi32, #tpu.memory_space<smem>>
    %c0_i32_202 = arith.constant 0 : i32
    %328 = arith.maxsi %327, %c0_i32_202 : i32
    %c127_i32_203 = arith.constant 127 : i32
    %329 = arith.minsi %328, %c127_i32_203 : i32
    %330 = arith.index_cast %329 : i32 to index
    %c0_204 = arith.constant 0 : index
    %331 = vector.load %arg2[%330, %c0_204] : memref<128x128xf32, #tpu.memory_space<vmem>>, vector<1x128xf32>
    %332 = arith.index_cast %c2_i32_200 : i32 to index
    %c0_205 = arith.constant 0 : index
    %333 = vector.load %arg8[%332, %c0_205] : memref<16x128xf32, #tpu.memory_space<vmem>>, vector<1x128xf32>
    tpu.vector_store %arg8[%332, %c0_205], %331 {strides = array<i32>} : memref<16x128xf32, #tpu.memory_space<vmem>>, vector<1x128xf32>,
    %c3_i32_206 = arith.constant 3 : i32
    %334 = arith.addi %0, %c3_i32_206 : i32
    %c2_207 = arith.constant 2 : index
    %335 = arith.index_cast %334 : i32 to index
    %336 = memref.load %arg1[%c2_207, %335] : memref<3x16xi32, #tpu.memory_space<smem>>
    %c0_i32_208 = arith.constant 0 : i32
    %337 = arith.maxsi %336, %c0_i32_208 : i32
    %c127_i32_209 = arith.constant 127 : i32
    %338 = arith.minsi %337, %c127_i32_209 : i32
    %339 = arith.index_cast %338 : i32 to index
    %c0_210 = arith.constant 0 : index
    %340 = vector.load %arg2[%339, %c0_210] : memref<128x128xf32, #tpu.memory_space<vmem>>, vector<1x128xf32>
    %341 = arith.index_cast %c3_i32_206 : i32 to index
    %c0_211 = arith.constant 0 : index
    %342 = vector.load %arg8[%341, %c0_211] : memref<16x128xf32, #tpu.memory_space<vmem>>, vector<1x128xf32>
    tpu.vector_store %arg8[%341, %c0_211], %340 {strides = array<i32>} : memref<16x128xf32, #tpu.memory_space<vmem>>, vector<1x128xf32>,
    %c4_i32_212 = arith.constant 4 : i32
    %343 = arith.addi %0, %c4_i32_212 : i32
    %c2_213 = arith.constant 2 : index
    %344 = arith.index_cast %343 : i32 to index
    %345 = memref.load %arg1[%c2_213, %344] : memref<3x16xi32, #tpu.memory_space<smem>>
    %c0_i32_214 = arith.constant 0 : i32
    %346 = arith.maxsi %345, %c0_i32_214 : i32
    %c127_i32_215 = arith.constant 127 : i32
    %347 = arith.minsi %346, %c127_i32_215 : i32
    %348 = arith.index_cast %347 : i32 to index
    %c0_216 = arith.constant 0 : index
    %349 = vector.load %arg2[%348, %c0_216] : memref<128x128xf32, #tpu.memory_space<vmem>>, vector<1x128xf32>
    %350 = arith.index_cast %c4_i32_212 : i32 to index
    %c0_217 = arith.constant 0 : index
    %351 = vector.load %arg8[%350, %c0_217] : memref<16x128xf32, #tpu.memory_space<vmem>>, vector<1x128xf32>
    tpu.vector_store %arg8[%350, %c0_217], %349 {strides = array<i32>} : memref<16x128xf32, #tpu.memory_space<vmem>>, vector<1x128xf32>,
    %c5_i32_218 = arith.constant 5 : i32
    %352 = arith.addi %0, %c5_i32_218 : i32
    %c2_219 = arith.constant 2 : index
    %353 = arith.index_cast %352 : i32 to index
    %354 = memref.load %arg1[%c2_219, %353] : memref<3x16xi32, #tpu.memory_space<smem>>
    %c0_i32_220 = arith.constant 0 : i32
    %355 = arith.maxsi %354, %c0_i32_220 : i32
    %c127_i32_221 = arith.constant 127 : i32
    %356 = arith.minsi %355, %c127_i32_221 : i32
    %357 = arith.index_cast %356 : i32 to index
    %c0_222 = arith.constant 0 : index
    %358 = vector.load %arg2[%357, %c0_222] : memref<128x128xf32, #tpu.memory_space<vmem>>, vector<1x128xf32>
    %359 = arith.index_cast %c5_i32_218 : i32 to index
    %c0_223 = arith.constant 0 : index
    %360 = vector.load %arg8[%359, %c0_223] : memref<16x128xf32, #tpu.memory_space<vmem>>, vector<1x128xf32>
    tpu.vector_store %arg8[%359, %c0_223], %358 {strides = array<i32>} : memref<16x128xf32, #tpu.memory_space<vmem>>, vector<1x128xf32>,
    %c6_i32_224 = arith.constant 6 : i32
    %361 = arith.addi %0, %c6_i32_224 : i32
    %c2_225 = arith.constant 2 : index
    %362 = arith.index_cast %361 : i32 to index
    %363 = memref.load %arg1[%c2_225, %362] : memref<3x16xi32, #tpu.memory_space<smem>>
    %c0_i32_226 = arith.constant 0 : i32
    %364 = arith.maxsi %363, %c0_i32_226 : i32
    %c127_i32_227 = arith.constant 127 : i32
    %365 = arith.minsi %364, %c127_i32_227 : i32
    %366 = arith.index_cast %365 : i32 to index
    %c0_228 = arith.constant 0 : index
    %367 = vector.load %arg2[%366, %c0_228] : memref<128x128xf32, #tpu.memory_space<vmem>>, vector<1x128xf32>
    %368 = arith.index_cast %c6_i32_224 : i32 to index
    %c0_229 = arith.constant 0 : index
    %369 = vector.load %arg8[%368, %c0_229] : memref<16x128xf32, #tpu.memory_space<vmem>>, vector<1x128xf32>
    tpu.vector_store %arg8[%368, %c0_229], %367 {strides = array<i32>} : memref<16x128xf32, #tpu.memory_space<vmem>>, vector<1x128xf32>,
    %c7_i32_230 = arith.constant 7 : i32
    %370 = arith.addi %0, %c7_i32_230 : i32
    %c2_231 = arith.constant 2 : index
    %371 = arith.index_cast %370 : i32 to index
    %372 = memref.load %arg1[%c2_231, %371] : memref<3x16xi32, #tpu.memory_space<smem>>
    %c0_i32_232 = arith.constant 0 : i32
    %373 = arith.maxsi %372, %c0_i32_232 : i32
    %c127_i32_233 = arith.constant 127 : i32
    %374 = arith.minsi %373, %c127_i32_233 : i32
    %375 = arith.index_cast %374 : i32 to index
    %c0_234 = arith.constant 0 : index
    %376 = vector.load %arg2[%375, %c0_234] : memref<128x128xf32, #tpu.memory_space<vmem>>, vector<1x128xf32>
    %377 = arith.index_cast %c7_i32_230 : i32 to index
    %c0_235 = arith.constant 0 : index
    %378 = vector.load %arg8[%377, %c0_235] : memref<16x128xf32, #tpu.memory_space<vmem>>, vector<1x128xf32>
    tpu.vector_store %arg8[%377, %c0_235], %376 {strides = array<i32>} : memref<16x128xf32, #tpu.memory_space<vmem>>, vector<1x128xf32>,
    %c8_i32_236 = arith.constant 8 : i32
    %379 = arith.addi %0, %c8_i32_236 : i32
    %c2_237 = arith.constant 2 : index
    %380 = arith.index_cast %379 : i32 to index
    %381 = memref.load %arg1[%c2_237, %380] : memref<3x16xi32, #tpu.memory_space<smem>>
    %c0_i32_238 = arith.constant 0 : i32
    %382 = arith.maxsi %381, %c0_i32_238 : i32
    %c127_i32_239 = arith.constant 127 : i32
    %383 = arith.minsi %382, %c127_i32_239 : i32
    %384 = arith.index_cast %383 : i32 to index
    %c0_240 = arith.constant 0 : index
    %385 = vector.load %arg2[%384, %c0_240] : memref<128x128xf32, #tpu.memory_space<vmem>>, vector<1x128xf32>
    %386 = arith.index_cast %c8_i32_236 : i32 to index
    %c0_241 = arith.constant 0 : index
    %387 = vector.load %arg8[%386, %c0_241] : memref<16x128xf32, #tpu.memory_space<vmem>>, vector<1x128xf32>
    tpu.vector_store %arg8[%386, %c0_241], %385 {strides = array<i32>} : memref<16x128xf32, #tpu.memory_space<vmem>>, vector<1x128xf32>,
    %c9_i32_242 = arith.constant 9 : i32
    %388 = arith.addi %0, %c9_i32_242 : i32
    %c2_243 = arith.constant 2 : index
    %389 = arith.index_cast %388 : i32 to index
    %390 = memref.load %arg1[%c2_243, %389] : memref<3x16xi32, #tpu.memory_space<smem>>
    %c0_i32_244 = arith.constant 0 : i32
    %391 = arith.maxsi %390, %c0_i32_244 : i32
    %c127_i32_245 = arith.constant 127 : i32
    %392 = arith.minsi %391, %c127_i32_245 : i32
    %393 = arith.index_cast %392 : i32 to index
    %c0_246 = arith.constant 0 : index
    %394 = vector.load %arg2[%393, %c0_246] : memref<128x128xf32, #tpu.memory_space<vmem>>, vector<1x128xf32>
    %395 = arith.index_cast %c9_i32_242 : i32 to index
    %c0_247 = arith.constant 0 : index
    %396 = vector.load %arg8[%395, %c0_247] : memref<16x128xf32, #tpu.memory_space<vmem>>, vector<1x128xf32>
    tpu.vector_store %arg8[%395, %c0_247], %394 {strides = array<i32>} : memref<16x128xf32, #tpu.memory_space<vmem>>, vector<1x128xf32>,
    %c10_i32_248 = arith.constant 10 : i32
    %397 = arith.addi %0, %c10_i32_248 : i32
    %c2_249 = arith.constant 2 : index
    %398 = arith.index_cast %397 : i32 to index
    %399 = memref.load %arg1[%c2_249, %398] : memref<3x16xi32, #tpu.memory_space<smem>>
    %c0_i32_250 = arith.constant 0 : i32
    %400 = arith.maxsi %399, %c0_i32_250 : i32
    %c127_i32_251 = arith.constant 127 : i32
    %401 = arith.minsi %400, %c127_i32_251 : i32
    %402 = arith.index_cast %401 : i32 to index
    %c0_252 = arith.constant 0 : index
    %403 = vector.load %arg2[%402, %c0_252] : memref<128x128xf32, #tpu.memory_space<vmem>>, vector<1x128xf32>
    %404 = arith.index_cast %c10_i32_248 : i32 to index
    %c0_253 = arith.constant 0 : index
    %405 = vector.load %arg8[%404, %c0_253] : memref<16x128xf32, #tpu.memory_space<vmem>>, vector<1x128xf32>
    tpu.vector_store %arg8[%404, %c0_253], %403 {strides = array<i32>} : memref<16x128xf32, #tpu.memory_space<vmem>>, vector<1x128xf32>,
    %c11_i32_254 = arith.constant 11 : i32
    %406 = arith.addi %0, %c11_i32_254 : i32
    %c2_255 = arith.constant 2 : index
    %407 = arith.index_cast %406 : i32 to index
    %408 = memref.load %arg1[%c2_255, %407] : memref<3x16xi32, #tpu.memory_space<smem>>
    %c0_i32_256 = arith.constant 0 : i32
    %409 = arith.maxsi %408, %c0_i32_256 : i32
    %c127_i32_257 = arith.constant 127 : i32
    %410 = arith.minsi %409, %c127_i32_257 : i32
    %411 = arith.index_cast %410 : i32 to index
    %c0_258 = arith.constant 0 : index
    %412 = vector.load %arg2[%411, %c0_258] : memref<128x128xf32, #tpu.memory_space<vmem>>, vector<1x128xf32>
    %413 = arith.index_cast %c11_i32_254 : i32 to index
    %c0_259 = arith.constant 0 : index
    %414 = vector.load %arg8[%413, %c0_259] : memref<16x128xf32, #tpu.memory_space<vmem>>, vector<1x128xf32>
    tpu.vector_store %arg8[%413, %c0_259], %412 {strides = array<i32>} : memref<16x128xf32, #tpu.memory_space<vmem>>, vector<1x128xf32>,
    %c12_i32_260 = arith.constant 12 : i32
    %415 = arith.addi %0, %c12_i32_260 : i32
    %c2_261 = arith.constant 2 : index
    %416 = arith.index_cast %415 : i32 to index
    %417 = memref.load %arg1[%c2_261, %416] : memref<3x16xi32, #tpu.memory_space<smem>>
    %c0_i32_262 = arith.constant 0 : i32
    %418 = arith.maxsi %417, %c0_i32_262 : i32
    %c127_i32_263 = arith.constant 127 : i32
    %419 = arith.minsi %418, %c127_i32_263 : i32
    %420 = arith.index_cast %419 : i32 to index
    %c0_264 = arith.constant 0 : index
    %421 = vector.load %arg2[%420, %c0_264] : memref<128x128xf32, #tpu.memory_space<vmem>>, vector<1x128xf32>
    %422 = arith.index_cast %c12_i32_260 : i32 to index
    %c0_265 = arith.constant 0 : index
    %423 = vector.load %arg8[%422, %c0_265] : memref<16x128xf32, #tpu.memory_space<vmem>>, vector<1x128xf32>
    tpu.vector_store %arg8[%422, %c0_265], %421 {strides = array<i32>} : memref<16x128xf32, #tpu.memory_space<vmem>>, vector<1x128xf32>,
    %c13_i32_266 = arith.constant 13 : i32
    %424 = arith.addi %0, %c13_i32_266 : i32
    %c2_267 = arith.constant 2 : index
    %425 = arith.index_cast %424 : i32 to index
    %426 = memref.load %arg1[%c2_267, %425] : memref<3x16xi32, #tpu.memory_space<smem>>
    %c0_i32_268 = arith.constant 0 : i32
    %427 = arith.maxsi %426, %c0_i32_268 : i32
    %c127_i32_269 = arith.constant 127 : i32
    %428 = arith.minsi %427, %c127_i32_269 : i32
    %429 = arith.index_cast %428 : i32 to index
    %c0_270 = arith.constant 0 : index
    %430 = vector.load %arg2[%429, %c0_270] : memref<128x128xf32, #tpu.memory_space<vmem>>, vector<1x128xf32>
    %431 = arith.index_cast %c13_i32_266 : i32 to index
    %c0_271 = arith.constant 0 : index
    %432 = vector.load %arg8[%431, %c0_271] : memref<16x128xf32, #tpu.memory_space<vmem>>, vector<1x128xf32>
    tpu.vector_store %arg8[%431, %c0_271], %430 {strides = array<i32>} : memref<16x128xf32, #tpu.memory_space<vmem>>, vector<1x128xf32>,
    %c14_i32_272 = arith.constant 14 : i32
    %433 = arith.addi %0, %c14_i32_272 : i32
    %c2_273 = arith.constant 2 : index
    %434 = arith.index_cast %433 : i32 to index
    %435 = memref.load %arg1[%c2_273, %434] : memref<3x16xi32, #tpu.memory_space<smem>>
    %c0_i32_274 = arith.constant 0 : i32
    %436 = arith.maxsi %435, %c0_i32_274 : i32
    %c127_i32_275 = arith.constant 127 : i32
    %437 = arith.minsi %436, %c127_i32_275 : i32
    %438 = arith.index_cast %437 : i32 to index
    %c0_276 = arith.constant 0 : index
    %439 = vector.load %arg2[%438, %c0_276] : memref<128x128xf32, #tpu.memory_space<vmem>>, vector<1x128xf32>
    %440 = arith.index_cast %c14_i32_272 : i32 to index
    %c0_277 = arith.constant 0 : index
    %441 = vector.load %arg8[%440, %c0_277] : memref<16x128xf32, #tpu.memory_space<vmem>>, vector<1x128xf32>
    tpu.vector_store %arg8[%440, %c0_277], %439 {strides = array<i32>} : memref<16x128xf32, #tpu.memory_space<vmem>>, vector<1x128xf32>,
    %c15_i32_278 = arith.constant 15 : i32
    %442 = arith.addi %0, %c15_i32_278 : i32
    %c2_279 = arith.constant 2 : index
    %443 = arith.index_cast %442 : i32 to index
    %444 = memref.load %arg1[%c2_279, %443] : memref<3x16xi32, #tpu.memory_space<smem>>
    %c0_i32_280 = arith.constant 0 : i32
    %445 = arith.maxsi %444, %c0_i32_280 : i32
    %c127_i32_281 = arith.constant 127 : i32
    %446 = arith.minsi %445, %c127_i32_281 : i32
    %447 = arith.index_cast %446 : i32 to index
    %c0_282 = arith.constant 0 : index
    %448 = vector.load %arg2[%447, %c0_282] : memref<128x128xf32, #tpu.memory_space<vmem>>, vector<1x128xf32>
    %449 = arith.index_cast %c15_i32_278 : i32 to index
    %c0_283 = arith.constant 0 : index
    %450 = vector.load %arg8[%449, %c0_283] : memref<16x128xf32, #tpu.memory_space<vmem>>, vector<1x128xf32>
    tpu.vector_store %arg8[%449, %c0_283], %448 {strides = array<i32>} : memref<16x128xf32, #tpu.memory_space<vmem>>, vector<1x128xf32>,
    %c16_i32_284 = arith.constant 16 : i32
    %c0_285 = arith.constant 0 : index
    %c0_286 = arith.constant 0 : index
    %451 = vector.load %arg8[%c0_285, %c0_286] : memref<16x128xf32, #tpu.memory_space<vmem>>, vector<16x128xf32>
    %cst_287 = arith.constant dense<0.000000e+00> : vector<16x128xf32>
    %452 = tpu.matmul %451, %1, %cst_287 {dimension_numbers = #tpu.dot_dimension_numbers<[1], [0], [0], [1], [0, 0, 1, 1], [], []>} : vector<16x128xf32>, vector<128x128xf32>, vector<16x128xf32> -> vector<16x128xf32>
    %453 = arith.addf %452, %5 : vector<16x128xf32>
    %cst_288 = arith.constant 0.000000e+00 : f32
    %454 = vector.broadcast %cst_288 : f32 to vector<16x128xf32>
    %455 = arith.maximumf %453, %454 : vector<16x128xf32>
    %456 = arith.addf %306, %455 : vector<16x128xf32>
    %cst_289 = arith.constant dense<0.000000e+00> : vector<16x128xf32>
    %457 = tpu.matmul %456, %2, %cst_289 {dimension_numbers = #tpu.dot_dimension_numbers<[1], [0], [0], [1], [0, 0, 1, 1], [], []>} : vector<16x128xf32>, vector<128x128xf32>, vector<16x128xf32> -> vector<16x128xf32>
    %c0_290 = arith.constant 0 : index
    %c0_291 = arith.constant 0 : index
    %458 = vector.load %arg6[%c0_290, %c0_291] : memref<1x128xf32, #tpu.memory_space<vmem>>, vector<1x128xf32>
    %cst_292 = arith.constant 3.000000e+00 : f32
    %459 = vector.broadcast %cst_292 : f32 to vector<1x128xf32>
    %460 = arith.mulf %459, %458 : vector<1x128xf32>
    %461 = vector.broadcast %460 : vector<1x128xf32> to vector<16x128xf32>
    %462 = arith.addf %457, %461 : vector<16x128xf32>
    %c0_293 = arith.constant 0 : index
    %c0_294 = arith.constant 0 : index
    %463 = vector.load %arg7[%c0_293, %c0_294] : memref<16x128xf32, #tpu.memory_space<vmem>>, vector<16x128xf32>
    tpu.vector_store %arg7[%c0_293, %c0_294], %462 {strides = array<i32>} : memref<16x128xf32, #tpu.memory_space<vmem>>, vector<16x128xf32>,
    return
  }
  func.func @transform_0(%arg0: i32, %arg1: memref<3x16xi32, #tpu.memory_space<smem>>) -> (i32, i32) {
    %c0_i32 = arith.constant 0 : i32
    %c0_i32_0 = arith.constant 0 : i32
    %c0_i32_1 = arith.constant 0 : i32
    return %c0_i32, %c0_i32_0 : i32, i32
  }
  func.func @transform_1(%arg0: i32, %arg1: memref<3x16xi32, #tpu.memory_space<smem>>) -> (i32, i32) {
    %c0_i32 = arith.constant 0 : i32
    %c0_i32_0 = arith.constant 0 : i32
    %c0_i32_1 = arith.constant 0 : i32
    return %c0_i32, %c0_i32_0 : i32, i32
  }
  func.func @transform_2(%arg0: i32, %arg1: memref<3x16xi32, #tpu.memory_space<smem>>) -> (i32, i32) {
    %c0_i32 = arith.constant 0 : i32
    %c0_i32_0 = arith.constant 0 : i32
    %c0_i32_1 = arith.constant 0 : i32
    return %c0_i32, %c0_i32_0 : i32, i32
  }
  func.func @transform_3(%arg0: i32, %arg1: memref<3x16xi32, #tpu.memory_space<smem>>) -> (i32, i32) {
    %c0_i32 = arith.constant 0 : i32
    %c0_i32_0 = arith.constant 0 : i32
    %c0_i32_1 = arith.constant 0 : i32
    return %c0_i32, %c0_i32_0 : i32, i32
  }
  func.func @transform_4(%arg0: i32, %arg1: memref<3x16xi32, #tpu.memory_space<smem>>) -> (i32, i32) {
    %c0_i32 = arith.constant 0 : i32
    %c0_i32_0 = arith.constant 0 : i32
    %c0_i32_1 = arith.constant 0 : i32
    return %c0_i32, %c0_i32_0 : i32, i32
  }
  func.func @transform_5(%arg0: i32, %arg1: memref<3x16xi32, #tpu.memory_space<smem>>) -> (i32, i32) {
    %c0_i32 = arith.constant 0 : i32
    %c0_i32_0 = arith.constant 0 : i32
    return %arg0, %c0_i32 : i32, i32
  }
}

</mosaic_0001>

<bundles_post_ra>
// kernel: _fused_forward.1
= control target key start
LH: loop header
LB: loop body
LE: loop exit
PB: predicated region body
PF: predicated region fallthrough
CT: control target
= control target key end

     0   :  { %s2329_s0 = inlined_call_operand.vmem [shape: s32[3,16], index: 0, kind: input, shape index: {}]   ;;  %s2330_s1 = inlined_call_operand.vmem [shape: f32[128,128], index: 1, kind: input, shape index: {}]   ;;  %s2331_s2 = inlined_call_operand.vmem [shape: f32[128,128], index: 2, kind: input, shape index: {}]   ;;  %s2332_s3 = inlined_call_operand.vmem [shape: f32[1,128], index: 3, kind: input, shape index: {}]   ;;  %s2333_s4 = inlined_call_operand.vmem [shape: f32[128,128], index: 4, kind: input, shape index: {}]   ;;  %s2334_s5 = inlined_call_operand.vmem [shape: f32[1,128], index: 5, kind: input, shape index: {}]   ;;  %s2335_s6 = inlined_call_operand.hbm [shape: f32[16,128], index: 6, kind: output, shape index: {}]  }
   0x1   :  { %s11_s23 = sshll.u32 %s2329_s0, 4  ;;  %s12_s23 = int_to_ptr.vmem [resolvable:$true] %s11_s23 }
   0x2   :  { %s1747_s24 = scalar_lea.vmem %s12_s23, 64  ;;  %p1752_p1 = scmp.lt.s32.totalorder %s12_s23, %s12_s23 }
   0x3   :  { %p1748_p0 = scmp.ne.s32.totalorder %s12_s23, %s1747_s24  ;;  %p1753_p2 = scmp.lt.s32.totalorder %s1747_s24, %s1747_s24 }
   0x5   :  { %p1754_p3 = por %p1753_p2, %p1752_p1 }
   0x7   :  { %p1755_p4 = pnand %p1754_p3, %p1748_p0 }
   0x9   :  { %1758 = shalt.err (!%p1755_p4)  }
   0xa   :  { %s1785_s25 = smov [#allocation4]  }
   0xb   :  { %14 = dma.vmem_to_smem %s12_s23, 64, %s1785_s25, [#allocation3] }
   0xc   :  { %1781 = dma.done.wait [#allocation3], 64 }
   0xd   :  { %1782 = vsyncadd [#allocation3], 4294967232 }
   0xe   :  { %16 = sfence }
   0xf   :  { %v29_v0 = vld [vmem:[%s2331_s2] sm:$0xff]  ;;  %v30_v1 = vld [vmem:[%s2331_s2 + $0x8] sm:$0xff]  ;;  %v31_v2 = vld [vmem:[%s2331_s2 + $0x10] sm:$0xff]  ;;  %s1836_s7 = sld [smem:[#allocation4]]  ;;  %s1843_s10 = sld [smem:[#allocation4 + $0x1]] }
  0x10   :  { %v1838_v3 = vpack.c.bf16 %v30_v1, %v29_v0  ;;  %v32_v4 = vld [vmem:[%s2331_s2 + $0x18] sm:$0xff]  ;;  %v33_v6 = vld [vmem:[%s2331_s2 + $0x20] sm:$0xff]  ;;  %v34_v7 = vld [vmem:[%s2331_s2 + $0x28] sm:$0xff]  ;;  %s1855_s15 = sld [smem:[#allocation4 + $0x2]]  ;;  %s1859_s16 = sld [smem:[#allocation4 + $0x3]] }
  0x11   :  { %v1845_v5 = vpack.c.bf16 %v32_v4, %v31_v2  ;;  %s1861_s17 = sld [smem:[#allocation4 + $0x4]]  ;;  %v1865_v8 = vpack.c.bf16 %v34_v7, %v33_v6  ;;  %s1867_s18 = sld [smem:[#allocation4 + $0x5]]  ;;  %v35_v9 = vld [vmem:[%s2331_s2 + $0x30] sm:$0xff]  ;;  %v36_v10 = vld [vmem:[%s2331_s2 + $0x38] sm:$0xff] }
  0x12   :  { %1616 = vmatprep.subr.bf16.mxu0 %v1838_v3  ;;  %1648 = vmatprep.subr.bf16.mxu1 %v1838_v3  ;;  %s1869_s19 = sld [smem:[#allocation4 + $0x6]] }
  0x13   :  { %1618 = vmatpush3.bf16.msra.mxu0 %v1838_v3  ;;  %1650 = vmatpush3.bf16.msra.mxu1 %v1838_v3 }
  0x14   :  { %1620 = vmatprep.subr.bf16.mxu0 %v1845_v5  ;;  %1652 = vmatprep.subr.bf16.mxu1 %v1845_v5 }
  0x15   :  { %p69_p5 = scmp.gt.s32.totalorder %s1836_s7, 0  ;;  %p1020_p6 = scmp.lt.s32.totalorder %s1836_s7, 127 }
  0x16   :  { %17 = vsyncpa [#allocation6], 0  ;;  %p78_p7 = scmp.gt.s32.totalorder %s1843_s10, 0  ;;  %p1026_p8 = scmp.lt.s32.totalorder %s1843_s10, 127  ;;  %v1886_v11 = vpack.c.bf16 %v36_v10, %v35_v9  ;;  %v37_v12 = vld [vmem:[%s2331_s2 + $0x40] sm:$0xff]  ;;  %v38_v13 = vld [vmem:[%s2331_s2 + $0x48] sm:$0xff] }
  0x17   :  { %1622 = vmatpush3.bf16.msra.mxu0 %v1845_v5  ;;  %1654 = vmatpush3.bf16.msra.mxu1 %v1845_v5  ;;  %s2337_s7 = smov (!%p69_p5, %s1836_s7), 0  ;;  %p87_p9 = scmp.gt.s32.totalorder %s1855_s15, 0  ;;  %v1903_v14 = vpack.c.bf16 %v38_v13, %v37_v12  ;;  %v39_v16 = vld [vmem:[%s2331_s2 + $0x50] sm:$0xff]  ;;  %v40_v17 = vld [vmem:[%s2331_s2 + $0x58] sm:$0xff]  ;;  %v41_v20 = vld [vmem:[%s2331_s2 + $0x60] sm:$0xff] }
  0x18   :  { %1624 = vmatprep.subr.bf16.mxu0 %v1865_v8  ;;  %1656 = vmatprep.subr.bf16.mxu1 %v1865_v8  ;;  %s2339_s10 = smov (!%p78_p7, %s1843_s10), 0  ;;  %s2341_s7 = smov (!%p1020_p6, %s2337_s7), 127  ;;  %v1922_v19 = vpack.c.bf16 %v40_v17, %v39_v16  ;;  %v42_v21 = vld [vmem:[%s2331_s2 + $0x68] sm:$0xff]  ;;  %v43_v24 = vld [vmem:[%s2331_s2 + $0x70] sm:$0xff]  ;;  %v44_v25 = vld [vmem:[%s2331_s2 + $0x78] sm:$0xff] }
  0x19   :  { %s2343_s10 = smov (!%p1026_p8, %s2339_s10), 127  ;;  %s73_s0 = scalar_lea.vmem %s2330_s1, %s2341_s7  ;;  %v1940_v23 = vpack.c.bf16 %v42_v21, %v41_v20  ;;  %v1959_v27 = vpack.c.bf16 %v44_v25, %v43_v24  ;;  %v47_v16 = vld [vmem:[%s2333_s4 + $0x10] sm:$0xff]  ;;  %v49_v20 = vld [vmem:[%s2333_s4 + $0x20] sm:$0xff]  ;;  %v50_v21 = vld [vmem:[%s2333_s4 + $0x28] sm:$0xff] }
  0x1a   :  { %v74_v15 = vld [vmem:[%s73_s0] sm:$0x1]  ;;  %s82_s9 = scalar_lea.vmem %s2330_s1, %s2343_s10  ;;  %p1032_p10 = scmp.lt.s32.totalorder %s1855_s15, 127  ;;  %v52_v24 = vld [vmem:[%s2333_s4 + $0x38] sm:$0xff] }
  0x1b   :  { %1626 = vmatpush3.bf16.msra.mxu0 %v1865_v8  ;;  %1658 = vmatpush3.bf16.msra.mxu1 %v1865_v8  ;;  %75 = vst [vmem:[#allocation2] sm:$0x1] %v74_v15  ;;  %v83_v18 = vld [vmem:[%s82_s9] sm:$0x1]  ;;  %s2345_s15 = smov (!%p87_p9, %s1855_s15), 0  ;;  %p96_p11 = scmp.gt.s32.totalorder %s1859_s16, 0 }
  0x1c   :  { %1628 = vmatprep.subr.bf16.mxu0 %v1886_v11  ;;  %1660 = vmatprep.subr.bf16.mxu1 %v1886_v11  ;;  %84 = vst [vmem:[#allocation2 + $0x1] sm:$0x1] %v83_v18  ;;  %p1038_p12 = scmp.lt.s32.totalorder %s1859_s16, 127  ;;  %s2347_s15 = smov (!%p1032_p10, %s2345_s15), 127  ;;  %v46_v15 = vld [vmem:[%s2333_s4 + $0x8] sm:$0xff]  ;;  %v48_v18 = vld [vmem:[%s2333_s4 + $0x18] sm:$0xff] }
  0x1d   :  { %s2349_s16 = smov (!%p96_p11, %s1859_s16), 0  ;;  %s91_s24 = scalar_lea.vmem %s2330_s1, %s2347_s15 }
  0x1e   :  { %p105_p13 = scmp.gt.s32.totalorder %s1861_s17, 0  ;;  %v92_v22 = vld [vmem:[%s91_s24] sm:$0x1]  ;;  %s2351_s16 = smov (!%p1038_p12, %s2349_s16), 127 }
  0x1f   :  { %1630 = vmatpush3.bf16.msra.mxu0 %v1886_v11  ;;  %1662 = vmatpush3.bf16.msra.mxu1 %v1886_v11  ;;  %93 = vst [vmem:[#allocation2 + $0x2] sm:$0x1] %v92_v22  ;;  %s100_s27 = scalar_lea.vmem %s2330_s1, %s2351_s16  ;;  %p1044_p0 = scmp.lt.s32.totalorder %s1861_s17, 127  ;;  %v1719_v22 = vpack.c.bf16 %v50_v21, %v49_v20 }
  0x20   :  { %1632 = vmatprep.subr.bf16.mxu0 %v1903_v14  ;;  %1664 = vmatprep.subr.bf16.mxu1 %v1903_v14  ;;  %s106_s25 = scalar_select %p105_p13, %s1861_s17, 0  ;;  %v101_v26 = vld [vmem:[%s100_s27] sm:$0x1] }
  0x21   :  { %p114_p1 = scmp.gt.s32.totalorder %s1867_s18, 0  ;;  %p1050_p2 = scmp.lt.s32.totalorder %s1867_s18, 127  ;;  %102 = vst [vmem:[#allocation2 + $0x3] sm:$0x1] %v101_v26  ;;  %v53_v26 = vld [vmem:[%s2333_s4 + $0x40] sm:$0xff] }
  0x22   :  { %s2353_s25 = smov (!%p1044_p0, %s106_s25), 127  ;;  %p123_p3 = scmp.gt.s32.totalorder %s1869_s19, 0 }
  0x23   :  { %1634 = vmatpush3.bf16.msra.mxu0 %v1903_v14  ;;  %1666 = vmatpush3.bf16.msra.mxu1 %v1903_v14  ;;  %s2355_s18 = smov (!%p114_p1, %s1867_s18), 0  ;;  %s109_s17 = scalar_lea.vmem %s2330_s1, %s2353_s25 }
  0x24   :  { %1636 = vmatprep.subr.bf16.mxu0 %v1922_v19  ;;  %1668 = vmatprep.subr.bf16.mxu1 %v1922_v19  ;;  %v110_v28 = vld [vmem:[%s109_s17] sm:$0x1]  ;;  %s2357_s18 = smov (!%p1050_p2, %s2355_s18), 127  ;;  %p1056_p4 = scmp.lt.s32.totalorder %s1869_s19, 127 }
  0x25   :  { %111 = vst [vmem:[#allocation2 + $0x4] sm:$0x1] %v110_v28  ;;  %s124_s8 = scalar_select %p123_p3, %s1869_s19, 0 }
  0x26   :  { %s118_s12 = scalar_lea.vmem %s2330_s1, %s2357_s18  ;;  %s1061_s13 = sld [smem:[#allocation4 + $0x7]] }
  0x27   :  { %1638 = vmatpush3.bf16.msra.mxu0 %v1922_v19  ;;  %1670 = vmatpush3.bf16.msra.mxu1 %v1922_v19  ;;  %v119_v29 = vld [vmem:[%s118_s12] sm:$0x1]  ;;  %s1115_s7 = sld [smem:[#allocation4 + $0x80]]  ;;  %s2359_s8 = smov (!%p1056_p4, %s124_s8), 127 }
  0x28   :  { %1640 = vmatprep.subr.bf16.mxu0 %v1940_v23  ;;  %1672 = vmatprep.subr.bf16.mxu1 %v1940_v23  ;;  %120 = vst [vmem:[#allocation2 + $0x5] sm:$0x1] %v119_v29  ;;  %s1974_s10 = sld [smem:[#allocation4 + $0x81]]  ;;  %s1976_s14 = sld [smem:[#allocation4 + $0x82]]  ;;  %v55_v29 = vld [vmem:[%s2333_s4 + $0x50] sm:$0xff] }
  0x29   :  { %s127_s19 = scalar_lea.vmem %s2330_s1, %s2359_s8  ;;  %s1983_s21 = sld [smem:[#allocation4 + $0x83]] }
  0x2a   :  { %v128_v30 = vld [vmem:[%s127_s19] sm:$0x1]  ;;  %s1985_s22 = sld [smem:[#allocation4 + $0x84]]  ;;  %s1987_s23 = sld [smem:[#allocation4 + $0x85]] }
  0x2b   :  { %1642 = vmatpush3.bf16.msra.mxu0 %v1940_v23  ;;  %1674 = vmatpush3.bf16.msra.mxu1 %v1940_v23  ;;  %129 = vst [vmem:[#allocation2 + $0x6] sm:$0x1] %v128_v30  ;;  %s1990_s24 = sld [smem:[#allocation4 + $0x86]]  ;;  %s1992_s25 = sld [smem:[#allocation4 + $0x87]]  ;;  %v56_v30 = vld [vmem:[%s2333_s4 + $0x58] sm:$0xff] }
  0x2c   :  { %1644 = vmatprep.subr.bf16.mxu0 %v1959_v27  ;;  %1676 = vmatprep.subr.bf16.mxu1 %v1959_v27  ;;  %p132_p5 = scmp.gt.s32.totalorder %s1061_s13, 0  ;;  %p1062_p6 = scmp.lt.s32.totalorder %s1061_s13, 127 }
  0x2d   :  { %p300_p7 = scmp.gt.s32.totalorder %s1115_s7, 0  ;;  %p1116_p8 = scmp.lt.s32.totalorder %s1115_s7, 127 }
  0x2e   :  { %s2361_s13 = smov (!%p132_p5, %s1061_s13), 0  ;;  %p315_p9 = scmp.gt.s32.totalorder %s1974_s10, 0 }
  0x2f   :  { %1646 = vmatpush3.bf16.msra.mxu0 %v1959_v27  ;;  %1678 = vmatpush3.bf16.msra.mxu1 %v1959_v27  ;;  %s2363_s7 = smov (!%p300_p7, %s1115_s7), 0  ;;  %s2365_s13 = smov (!%p1062_p6, %s2361_s13), 127 }
  0x30   :  { %1680 = vmatprep.subr.bf16.mxu0 %v1838_v3  ;;  %s2367_s7 = smov (!%p1116_p8, %s2363_s7), 127  ;;  %s136_s27 = scalar_lea.vmem %s2330_s1, %s2365_s13 }
  0x31   :  { %v137_v31 = vld [vmem:[%s136_s27] sm:$0x1]  ;;  %s304_s0 = scalar_lea.vmem %s2330_s1, %s2367_s7  ;;  %p1122_p10 = scmp.lt.s32.totalorder %s1974_s10, 127 }
  0x32   :  { %138 = vst [vmem:[#allocation2 + $0x7] sm:$0x1] %v137_v31  ;;  %s2369_s10 = smov (!%p315_p9, %s1974_s10), 0  ;;  %p330_p11 = scmp.gt.s32.totalorder %s1976_s14, 0  ;;  %v305_v32 = vld [vmem:[%s304_s0] sm:$0x1]  ;;  %v1731_v31 = vpack.c.bf16 %v56_v30, %v55_v29 }
  0x33   :  { %p1128_p12 = scmp.lt.s32.totalorder %s1976_s14, 127  ;;  %s2371_s10 = smov (!%p1122_p10, %s2369_s10), 127 }
  0x34   :  { %s2373_s14 = smov (!%p330_p11, %s1976_s14), 0  ;;  %s319_s2 = scalar_lea.vmem %s2330_s1, %s2371_s10 }
  0x35   :  { %p345_p13 = scmp.gt.s32.totalorder %s1983_s21, 0  ;;  %v320_v33 = vld [vmem:[%s319_s2] sm:$0x1]  ;;  %s2375_s14 = smov (!%p1128_p12, %s2373_s14), 127 }
  0x36   :  { %s334_s11 = scalar_lea.vmem %s2330_s1, %s2375_s14  ;;  %p1134_p0 = scmp.lt.s32.totalorder %s1983_s21, 127 }
  0x37   :  { %s346_s17 = scalar_select %p345_p13, %s1983_s21, 0  ;;  %v335_v35 = vld [vmem:[%s334_s11] sm:$0x1] }
  0x38   :  { %p360_p1 = scmp.gt.s32.totalorder %s1985_s22, 0  ;;  %p1140_p2 = scmp.lt.s32.totalorder %s1985_s22, 127 }
  0x39   :  { %v211_v34 = vld [vmem:[#allocation2] sm:$0xff]  ;;  %s2377_s17 = smov (!%p1134_p0, %s346_s17), 127  ;;  %p375_p3 = scmp.gt.s32.totalorder %s1987_s23, 0 }
  0x3a   :  { %1507 = vmatprep.mubr.f32.mxu0 %v211_v34  ;;  %306 = vst [vmem:[#allocation2] sm:$0x1] %v305_v32  ;;  %321 = vst [vmem:[#allocation2 + $0x1] sm:$0x1] %v320_v33  ;;  %s2379_s22 = smov (!%p360_p1, %s1985_s22), 0  ;;  %s349_s7 = scalar_lea.vmem %s2330_s1, %s2377_s17  ;;  %v57_v32 = vld [vmem:[%s2333_s4 + $0x60] sm:$0xff] }
  0x3b   :  { %336 = vst [vmem:[#allocation2 + $0x2] sm:$0x1] %v335_v35  ;;  %v350_v36 = vld [vmem:[%s349_s7] sm:$0x1]  ;;  %s2381_s22 = smov (!%p1140_p2, %s2379_s22), 127  ;;  %p1146_p4 = scmp.lt.s32.totalorder %s1987_s23, 127 }
  0x3c   :  { %351 = vst [vmem:[#allocation2 + $0x3] sm:$0x1] %v350_v36  ;;  %s376_s10 = scalar_select %p375_p3, %s1987_s23, 0  ;;  %v58_v33 = vld [vmem:[%s2333_s4 + $0x68] sm:$0xff]  ;;  %v59_v35 = vld [vmem:[%s2333_s4 + $0x70] sm:$0xff]  ;;  %v60_v36 = vld [vmem:[%s2333_s4 + $0x78] sm:$0xff] }
  0x3d   :  { %s364_s18 = scalar_lea.vmem %s2330_s1, %s2381_s22  ;;  %p390_p5 = scmp.gt.s32.totalorder %s1990_s24, 0  ;;  %v1735_v34 = vpack.c.bf16 %v58_v33, %v57_v32 }
  0x3e   :  { %v365_v37 = vld [vmem:[%s364_s18] sm:$0x1]  ;;  %p1152_p6 = scmp.lt.s32.totalorder %s1990_s24, 127  ;;  %s2383_s10 = smov (!%p1146_p4, %s376_s10), 127 }
  0x3f   :  { %366 = vst [vmem:[#allocation2 + $0x4] sm:$0x1] %v365_v37  ;;  %s2385_s24 = smov (!%p390_p5, %s1990_s24), 0  ;;  %s379_s26 = scalar_lea.vmem %s2330_s1, %s2383_s10  ;;  %v1739_v37 = vpack.c.bf16 %v60_v36, %v59_v35 }
  0x40   :  { %p405_p7 = scmp.gt.s32.totalorder %s1992_s25, 0  ;;  %v380_v38 = vld [vmem:[%s379_s26] sm:$0x1]  ;;  %s2387_s24 = smov (!%p1152_p6, %s2385_s24), 127 }
  0x41   :  { %381 = vst [vmem:[#allocation2 + $0x5] sm:$0x1] %v380_v38  ;;  %s394_s22 = scalar_lea.vmem %s2330_s1, %s2387_s24  ;;  %p1158_p8 = scmp.lt.s32.totalorder %s1992_s25, 127 }
  0x42   :  { %s406_s15 = scalar_select %p405_p7, %s1992_s25, 0  ;;  %v395_v39 = vld [vmem:[%s394_s22] sm:$0x1] }
  0x43   :  { %s1067_s23 = sld [smem:[#allocation4 + $0x8]]  ;;  %s1073_s29 = sld [smem:[#allocation4 + $0x9]]  ;;  %396 = vst [vmem:[#allocation2 + $0x6] sm:$0x1] %v395_v39 }
  0x44   :  { %s2389_s15 = smov (!%p1158_p8, %s406_s15), 127  ;;  %s2039_s0 = sld [smem:[#allocation4 + $0xa]] }
  0x45   :  { %s2041_s30 = sld [smem:[#allocation4 + $0xb]]  ;;  %s409_s17 = scalar_lea.vmem %s2330_s1, %s2389_s15 }
  0x46   :  { %s2046_s8 = sld [smem:[#allocation4 + $0xc]]  ;;  %v410_v40 = vld [vmem:[%s409_s17] sm:$0x1]  ;;  %s2048_s9 = sld [smem:[#allocation4 + $0xd]] }
  0x47   :  { %s2050_s24 = sld [smem:[#allocation4 + $0xe]]  ;;  %411 = vst [vmem:[#allocation2 + $0x7] sm:$0x1] %v410_v40  ;;  %s2052_s25 = sld [smem:[#allocation4 + $0xf]]  ;;  %v1019_v40 = vld [vmem:[%s2332_s3] ss:$0 sm:$0xff] }
  0x48   :  { %s2054_s11 = sld [smem:[#allocation4 + $0x88]]  ;;  %s1175_s14 = sld [smem:[#allocation4 + $0x8a]] }
  0x49   :  { %p141_p9 = scmp.gt.s32.totalorder %s1067_s23, 0  ;;  %p1068_p10 = scmp.lt.s32.totalorder %s1067_s23, 127 }
  0x4a   :  { %p150_p11 = scmp.gt.s32.totalorder %s1073_s29, 0  ;;  %p1074_p12 = scmp.lt.s32.totalorder %s1073_s29, 127 }
  0x4b   :  { %s2391_s23 = smov (!%p141_p9, %s1067_s23), 0  ;;  %p159_p13 = scmp.gt.s32.totalorder %s2039_s0, 0 }
  0x4c   :  { %s2393_s29 = smov (!%p150_p11, %s1073_s29), 0  ;;  %s2395_s23 = smov (!%p1068_p10, %s2391_s23), 127 }
  0x4d   :  { %s2397_s29 = smov (!%p1074_p12, %s2393_s29), 127  ;;  %s145_s7 = scalar_lea.vmem %s2330_s1, %s2395_s23 }
  0x4e   :  { %v532_v41 = vld [vmem:[#allocation2] sm:$0xff]  ;;  %s154_s20 = scalar_lea.vmem %s2330_s1, %s2397_s29  ;;  %p1080_p0 = scmp.lt.s32.totalorder %s2039_s0, 127 }
  0x4f   :  { %1542 = vmatprep.mubr.f32.mxu1 %v532_v41  ;;  %v146_v42 = vld [vmem:[%s145_s7] sm:$0x1]  ;;  %s2399_s0 = smov (!%p159_p13, %s2039_s0), 0  ;;  %p168_p1 = scmp.gt.s32.totalorder %s2041_s30, 0 }
  0x50   :  { %147 = vst [vmem:[#allocation2 + $0x8] sm:$0x1] %v146_v42  ;;  %v155_v43 = vld [vmem:[%s154_s20] sm:$0x1]  ;;  %p1086_p2 = scmp.lt.s32.totalorder %s2041_s30, 127  ;;  %s2401_s0 = smov (!%p1080_p0, %s2399_s0), 127 }
  0x51   :  { %156 = vst [vmem:[#allocation2 + $0x9] sm:$0x1] %v155_v43  ;;  %s2403_s30 = smov (!%p168_p1, %s2041_s30), 0  ;;  %s163_s21 = scalar_lea.vmem %s2330_s1, %s2401_s0 }
  0x52   :  { %p177_p3 = scmp.gt.s32.totalorder %s2046_s8, 0  ;;  %v164_v44 = vld [vmem:[%s163_s21] sm:$0x1]  ;;  %s2405_s30 = smov (!%p1086_p2, %s2403_s30), 127 }
  0x53   :  { %165 = vst [vmem:[#allocation2 + $0xa] sm:$0x1] %v164_v44  ;;  %s172_s28 = scalar_lea.vmem %s2330_s1, %s2405_s30  ;;  %p1092_p4 = scmp.lt.s32.totalorder %s2046_s8, 127 }
  0x54   :  { %s178_s26 = scalar_select %p177_p3, %s2046_s8, 0  ;;  %v173_v45 = vld [vmem:[%s172_s28] sm:$0x1] }
  0x55   :  { %p186_p5 = scmp.gt.s32.totalorder %s2048_s9, 0  ;;  %p1098_p6 = scmp.lt.s32.totalorder %s2048_s9, 127  ;;  %174 = vst [vmem:[#allocation2 + $0xb] sm:$0x1] %v173_v45 }
  0x56   :  { %s2407_s26 = smov (!%p1092_p4, %s178_s26), 127  ;;  %p195_p7 = scmp.gt.s32.totalorder %s2050_s24, 0 }
  0x57   :  { %s2409_s9 = smov (!%p186_p5, %s2048_s9), 0  ;;  %s181_s29 = scalar_lea.vmem %s2330_s1, %s2407_s26 }
  0x58   :  { %v182_v46 = vld [vmem:[%s181_s29] sm:$0x1]  ;;  %s2411_s9 = smov (!%p1098_p6, %s2409_s9), 127  ;;  %p1104_p8 = scmp.lt.s32.totalorder %s2050_s24, 127 }
  0x59   :  { %183 = vst [vmem:[#allocation2 + $0xc] sm:$0x1] %v182_v46  ;;  %s196_s0 = scalar_select %p195_p7, %s2050_s24, 0 }
  0x5a   :  { %s190_s2 = scalar_lea.vmem %s2330_s1, %s2411_s9  ;;  %p204_p9 = scmp.gt.s32.totalorder %s2052_s25, 0 }
  0x5b   :  { %v191_v47 = vld [vmem:[%s190_s2] sm:$0x1]  ;;  %p1110_p10 = scmp.lt.s32.totalorder %s2052_s25, 127  ;;  %s2413_s0 = smov (!%p1104_p8, %s196_s0), 127 }
  0x5c   :  { %192 = vst [vmem:[#allocation2 + $0xd] sm:$0x1] %v191_v47  ;;  %s2415_s25 = smov (!%p204_p9, %s2052_s25), 0  ;;  %s199_s12 = scalar_lea.vmem %s2330_s1, %s2413_s0 }
  0x5d   :  { %p420_p11 = scmp.gt.s32.totalorder %s2054_s11, 0  ;;  %v200_v48 = vld [vmem:[%s199_s12] sm:$0x1]  ;;  %s2417_s25 = smov (!%p1110_p10, %s2415_s25), 127 }
  0x5e   :  { %201 = vst [vmem:[#allocation2 + $0xe] sm:$0x1] %v200_v48  ;;  %s208_s9 = scalar_lea.vmem %s2330_s1, %s2417_s25  ;;  %p1164_p12 = scmp.lt.s32.totalorder %s2054_s11, 127 }
  0x5f   :  { %s421_s13 = scalar_select %p420_p11, %s2054_s11, 0  ;;  %v209_v49 = vld [vmem:[%s208_s9] sm:$0x1] }
  0x60   :  { %s1169_s24 = sld [smem:[#allocation4 + $0x89]]  ;;  %210 = vst [vmem:[#allocation2 + $0xf] sm:$0x1] %v209_v49  ;;  %s2101_s20 = sld [smem:[#allocation4 + $0x8b]] }
  0x61   :  { %s2419_s13 = smov (!%p1164_p12, %s421_s13), 127  ;;  %s2103_s18 = sld [smem:[#allocation4 + $0x8c]] }
  0x62   :  { %s424_s26 = scalar_lea.vmem %s2330_s1, %s2419_s13  ;;  %s2108_s15 = sld [smem:[#allocation4 + $0x8d]] }
  0x63   :  { %s2110_s27 = sld [smem:[#allocation4 + $0x8e]]  ;;  %s2112_s28 = sld [smem:[#allocation4 + $0x8f]]  ;;  %v425_v50 = vld [vmem:[%s424_s26] sm:$0x1] }
  0x64   :  { %s2114_s25 = sld [smem:[#allocation4 + $0x100]]  ;;  %s2116_s11 = sld [smem:[#allocation4 + $0x101]] }
  0x65   :  { %p450_p1 = scmp.gt.s32.totalorder %s1175_s14, 0  ;;  %p1176_p2 = scmp.lt.s32.totalorder %s1175_s14, 127 }
  0x66   :  { %p435_p13 = scmp.gt.s32.totalorder %s1169_s24, 0  ;;  %p1170_p0 = scmp.lt.s32.totalorder %s1169_s24, 127 }
  0x67   :  { %v212_v51 = vld [vmem:[#allocation2 + $0x8] sm:$0xff]  ;;  %s2423_s14 = smov (!%p450_p1, %s1175_s14), 0  ;;  %p465_p3 = scmp.gt.s32.totalorder %s2101_s20, 0 }
  0x68   :  { %s2421_s24 = smov (!%p435_p13, %s1169_s24), 0  ;;  %1508 = vmatmul.mubr.f32.vlgmr.msra.gmra.mrb[0].mxu0 %v212_v51  ;;  %426 = vst [vmem:[#allocation2 + $0x8] sm:$0x1] %v425_v50  ;;  %s2427_s14 = smov (!%p1176_p2, %s2423_s14), 127 }
  0x69   :  { %s2425_s24 = smov (!%p1170_p0, %s2421_s24), 127  ;;  %1682 = vmatpush3.bf16.msra.mxu0 %v1838_v3  ;;  %s454_s16 = scalar_lea.vmem %s2330_s1, %s2427_s14 }
  0x6a   :  { %1684 = vmatprep.subr.bf16.mxu0 %v1845_v5  ;;  %s439_s29 = scalar_lea.vmem %s2330_s1, %s2425_s24  ;;  %p1182_p4 = scmp.lt.s32.totalorder %s2101_s20, 127  ;;  %v455_v53 = vld [vmem:[%s454_s16] sm:$0x1] }
  0x6b   :  { %v440_v52 = vld [vmem:[%s439_s29] sm:$0x1]  ;;  %s2429_s20 = smov (!%p465_p3, %s2101_s20), 0  ;;  %456 = vst [vmem:[#allocation2 + $0xa] sm:$0x1] %v455_v53  ;;  %p480_p5 = scmp.gt.s32.totalorder %s2103_s18, 0 }
  0x6c   :  { %441 = vst [vmem:[#allocation2 + $0x9] sm:$0x1] %v440_v52  ;;  %p1188_p6 = scmp.lt.s32.totalorder %s2103_s18, 127  ;;  %s2431_s20 = smov (!%p1182_p4, %s2429_s20), 127 }
  0x6d   :  { %1686 = vmatpush3.bf16.msra.mxu0 %v1845_v5  ;;  %s2433_s18 = smov (!%p480_p5, %s2103_s18), 0  ;;  %s469_s8 = scalar_lea.vmem %s2330_s1, %s2431_s20 }
  0x6e   :  { %1688 = vmatprep.subr.bf16.mxu0 %v1865_v8  ;;  %p495_p7 = scmp.gt.s32.totalorder %s2108_s15, 0  ;;  %v470_v54 = vld [vmem:[%s469_s8] sm:$0x1]  ;;  %s2435_s18 = smov (!%p1188_p6, %s2433_s18), 127 }
  0x6f   :  { %471 = vst [vmem:[#allocation2 + $0xb] sm:$0x1] %v470_v54  ;;  %s484_s10 = scalar_lea.vmem %s2330_s1, %s2435_s18  ;;  %p1194_p8 = scmp.lt.s32.totalorder %s2108_s15, 127 }
  0x70   :  { %s496_s12 = scalar_select %p495_p7, %s2108_s15, 0  ;;  %v485_v55 = vld [vmem:[%s484_s10] sm:$0x1] }
  0x71   :  { %1690 = vmatpush3.bf16.msra.mxu0 %v1865_v8  ;;  %p510_p9 = scmp.gt.s32.totalorder %s2110_s27, 0  ;;  %p1200_p10 = scmp.lt.s32.totalorder %s2110_s27, 127  ;;  %486 = vst [vmem:[#allocation2 + $0xc] sm:$0x1] %v485_v55 }
  0x72   :  { %1692 = vmatprep.subr.bf16.mxu0 %v1886_v11  ;;  %s2437_s12 = smov (!%p1194_p8, %s496_s12), 127  ;;  %p525_p11 = scmp.gt.s32.totalorder %s2112_s28, 0 }
  0x73   :  { %s2439_s27 = smov (!%p510_p9, %s2110_s27), 0  ;;  %s499_s14 = scalar_lea.vmem %s2330_s1, %s2437_s12 }
  0x74   :  { %v500_v56 = vld [vmem:[%s499_s14] sm:$0x1]  ;;  %s2441_s27 = smov (!%p1200_p10, %s2439_s27), 127  ;;  %p1206_p12 = scmp.lt.s32.totalorder %s2112_s28, 127 }
  0x75   :  { %1694 = vmatpush3.bf16.msra.mxu0 %v1886_v11  ;;  %501 = vst [vmem:[#allocation2 + $0xd] sm:$0x1] %v500_v56  ;;  %s526_s20 = scalar_select %p525_p11, %s2112_s28, 0 }
  0x76   :  { %1696 = vmatprep.subr.bf16.mxu0 %v1903_v14  ;;  %s514_s21 = scalar_lea.vmem %s2330_s1, %s2441_s27  ;;  %p617_p13 = scmp.gt.s32.totalorder %s2114_s25, 0 }
  0x77   :  { %v515_v57 = vld [vmem:[%s514_s21] sm:$0x1]  ;;  %p1212_p0 = scmp.lt.s32.totalorder %s2114_s25, 127  ;;  %s2443_s20 = smov (!%p1206_p12, %s526_s20), 127 }
  0x78   :  { %516 = vst [vmem:[#allocation2 + $0xe] sm:$0x1] %v515_v57  ;;  %s2445_s25 = smov (!%p617_p13, %s2114_s25), 0  ;;  %s529_s22 = scalar_lea.vmem %s2330_s1, %s2443_s20 }
  0x79   :  { %1698 = vmatpush3.bf16.msra.mxu0 %v1903_v14  ;;  %p628_p1 = scmp.gt.s32.totalorder %s2116_s11, 0  ;;  %v530_v58 = vld [vmem:[%s529_s22] sm:$0x1]  ;;  %s2447_s25 = smov (!%p1212_p0, %s2445_s25), 127 }
  0x7a   :  { %1700 = vmatprep.subr.bf16.mxu0 %v1922_v19  ;;  %531 = vst [vmem:[#allocation2 + $0xf] sm:$0x1] %v530_v58  ;;  %s621_s29 = scalar_lea.vmem %s2330_s1, %s2447_s25  ;;  %p1218_p2 = scmp.lt.s32.totalorder %s2116_s11, 127  ;;  %v45_v14 = vld [vmem:[%s2333_s4] sm:$0xff] }
  0x7b   :  { %s629_s27 = scalar_select %p628_p1, %s2116_s11, 0  ;;  %v622_v59 = vld [vmem:[%s621_s29] sm:$0x1]  ;;  %v1711_v17 = vpack.c.bf16 %v46_v15, %v45_v14 }
  0x7c   :  { %s1223_s0 = sld [smem:[#allocation4 + $0x102]]  ;;  %s1229_s30 = sld [smem:[#allocation4 + $0x103]]  ;;  %623 = vst [vmem:[#allocation2] sm:$0x1] %v622_v59 }
  0x7d   :  { %1702 = vmatpush3.bf16.msra.mxu0 %v1922_v19  ;;  %s2449_s27 = smov (!%p1218_p2, %s629_s27), 127  ;;  %s2178_s16 = sld [smem:[#allocation4 + $0x104]]  ;;  %v1715_v19 = vpack.c.bf16 %v48_v18, %v47_v16  ;;  %1712 = vmatprep.subr.bf16.mxu1 %v1711_v17 }
  0x7e   :  { %1704 = vmatprep.subr.bf16.mxu0 %v1940_v23  ;;  %s2180_s2 = sld [smem:[#allocation4 + $0x105]]  ;;  %s632_s12 = scalar_lea.vmem %s2330_s1, %s2449_s27 }
  0x7f   :  { %s2185_s13 = sld [smem:[#allocation4 + $0x106]]  ;;  %v633_v60 = vld [vmem:[%s632_s12] sm:$0x1]  ;;  %s2187_s25 = sld [smem:[#allocation4 + $0x107]] }
  0x80   :  { %s2189_s11 = sld [smem:[#allocation4 + $0x108]]  ;;  %634 = vst [vmem:[#allocation2 + $0x1] sm:$0x1] %v633_v60  ;;  %s2191_s7 = sld [smem:[#allocation4 + $0x109]] }
  0x81   :  { %1706 = vmatpush3.bf16.msra.mxu0 %v1940_v23  ;;  %v533_v61 = vld [vmem:[#allocation2 + $0x8] sm:$0xff]  ;;  %s2193_s10 = sld [smem:[#allocation4 + $0x10a]]  ;;  %s1283_s18 = sld [smem:[#allocation4 + $0x10c]]  ;;  %v51_v23 = vld [vmem:[%s2333_s4 + $0x30] sm:$0xff] }
  0x82   :  { %1708 = vmatprep.subr.bf16.mxu0 %v1959_v27  ;;  %1543 = vmatmul.mubr.f32.vlgmr.msra.gmra.mrb[0].mxu1 %v533_v61  ;;  %p639_p3 = scmp.gt.s32.totalorder %s1223_s0, 0  ;;  %p1224_p4 = scmp.lt.s32.totalorder %s1223_s0, 127  ;;  %v1723_v25 = vpack.c.bf16 %v52_v24, %v51_v23  ;;  %v873_v61 = vlaneseq }
  0x83   :  { %p650_p5 = scmp.gt.s32.totalorder %s1229_s30, 0  ;;  %p1230_p6 = scmp.lt.s32.totalorder %s1229_s30, 127  ;;  %1714 = vmatpush3.bf16.msra.mxu1 %v1711_v17 }
  0x84   :  { %s2451_s0 = smov (!%p639_p3, %s1223_s0), 0  ;;  %p661_p7 = scmp.gt.s32.totalorder %s2178_s16, 0  ;;  %1716 = vmatprep.subr.bf16.mxu1 %v1715_v19 }
  0x85   :  { %1710 = vmatpush3.bf16.msra.mxu0 %v1959_v27  ;;  %s2453_s30 = smov (!%p650_p5, %s1229_s30), 0  ;;  %s2455_s0 = smov (!%p1224_p4, %s2451_s0), 127  ;;  %v54_v27 = vld [vmem:[%s2333_s4 + $0x48] sm:$0xff] }
  0x86   :  { %s2457_s30 = smov (!%p1230_p6, %s2453_s30), 127  ;;  %s643_s14 = scalar_lea.vmem %s2330_s1, %s2455_s0  ;;  %v1727_v28 = vpack.c.bf16 %v54_v27, %v53_v26 }
  0x87   :  { %v644_v62 = vld [vmem:[%s643_s14] sm:$0x1]  ;;  %s654_s19 = scalar_lea.vmem %s2330_s1, %s2457_s30  ;;  %p1236_p8 = scmp.lt.s32.totalorder %s2178_s16, 127  ;;  %1718 = vmatpush3.bf16.msra.mxu1 %v1715_v19 }
  0x88   :  { %645 = vst [vmem:[#allocation2 + $0x2] sm:$0x1] %v644_v62  ;;  %v655_v63 = vld [vmem:[%s654_s19] sm:$0x1]  ;;  %s2459_s16 = smov (!%p661_p7, %s2178_s16), 0  ;;  %p672_p9 = scmp.gt.s32.totalorder %s2180_s2, 0  ;;  %1720 = vmatprep.subr.bf16.mxu1 %v1719_v22 }
  0x89   :  { %656 = vst [vmem:[#allocation2 + $0x3] sm:$0x1] %v655_v63  ;;  %p1242_p10 = scmp.lt.s32.totalorder %s2180_s2, 127  ;;  %s2461_s16 = smov (!%p1236_p8, %s2459_s16), 127  ;;  %v874_v62 = vshrl.u32 %v873_v61, 7 }
  0x8a   :  { %s2463_s2 = smov (!%p672_p9, %s2180_s2), 0  ;;  %s665_s15 = scalar_lea.vmem %s2330_s1, %s2461_s16  ;;  %v870_v63 = vld [vmem:[%s2334_s5] sm:$0x1] }
  0x8b   :  { %p683_p11 = scmp.gt.s32.totalorder %s2185_s13, 0  ;;  %v666_v0 = vld [vmem:[%s665_s15] sm:$0x1]  ;;  %s2465_s2 = smov (!%p1242_p10, %s2463_s2), 127  ;;  %1722 = vmatpush3.bf16.msra.mxu1 %v1719_v22 }
  0x8c   :  { %667 = vst [vmem:[#allocation2 + $0x4] sm:$0x1] %v666_v0  ;;  %s676_s23 = scalar_lea.vmem %s2330_s1, %s2465_s2  ;;  %p1248_p12 = scmp.lt.s32.totalorder %s2185_s13, 127  ;;  %1724 = vmatprep.subr.bf16.mxu1 %v1723_v25  ;;  %v871_v0 = vmul.f32 3.0, %v870_v63 }
  0x8d   :  { %s684_s22 = scalar_select %p683_p11, %s2185_s13, 0  ;;  %v677_v1 = vld [vmem:[%s676_s23] sm:$0x1] }
  0x8e   :  { %p694_p13 = scmp.gt.s32.totalorder %s2187_s25, 0  ;;  %p1254_p0 = scmp.lt.s32.totalorder %s2187_s25, 127  ;;  %678 = vst [vmem:[#allocation2 + $0x5] sm:$0x1] %v677_v1  ;;  %v875_v1 = vsub.s32 0, %v874_v62 }
  0x8f   :  { %s2467_s22 = smov (!%p1248_p12, %s684_s22), 127  ;;  %p705_p1 = scmp.gt.s32.totalorder %s2189_s11, 0  ;;  %1726 = vmatpush3.bf16.msra.mxu1 %v1723_v25 }
  0x90   :  { %s2469_s25 = smov (!%p694_p13, %s2187_s25), 0  ;;  %s687_s30 = scalar_lea.vmem %s2330_s1, %s2467_s22  ;;  %1728 = vmatprep.subr.bf16.mxu1 %v1727_v28 }
  0x91   :  { %v688_v2 = vld [vmem:[%s687_s30] sm:$0x1]  ;;  %s2471_s25 = smov (!%p1254_p0, %s2469_s25), 127  ;;  %p1260_p2 = scmp.lt.s32.totalorder %s2189_s11, 127 }
  0x92   :  { %689 = vst [vmem:[#allocation2 + $0x6] sm:$0x1] %v688_v2  ;;  %s706_s16 = scalar_select %p705_p1, %s2189_s11, 0  ;;  %v876_v2 = vrot.slane %v871_v0, %v875_v1 }
  0x93   :  { %s698_s8 = scalar_lea.vmem %s2330_s1, %s2471_s25  ;;  %p716_p3 = scmp.gt.s32.totalorder %s2191_s7, 0  ;;  %1730 = vmatpush3.bf16.msra.mxu1 %v1727_v28 }
  0x94   :  { %v699_v3 = vld [vmem:[%s698_s8] sm:$0x1]  ;;  %p1266_p4 = scmp.lt.s32.totalorder %s2191_s7, 127  ;;  %s2473_s16 = smov (!%p1260_p2, %s706_s16), 127  ;;  %1732 = vmatprep.subr.bf16.mxu1 %v1731_v31 }
  0x95   :  { %700 = vst [vmem:[#allocation2 + $0x7] sm:$0x1] %v699_v3  ;;  %s2475_s7 = smov (!%p716_p3, %s2191_s7), 0  ;;  %s709_s9 = scalar_lea.vmem %s2330_s1, %s2473_s16 }
  0x96   :  { %p727_p5 = scmp.gt.s32.totalorder %s2193_s10, 0  ;;  %v710_v4 = vld [vmem:[%s709_s9] sm:$0x1]  ;;  %s2477_s7 = smov (!%p1266_p4, %s2475_s7), 127 }
  0x97   :  { %711 = vst [vmem:[#allocation2 + $0x8] sm:$0x1] %v710_v4  ;;  %s720_s25 = scalar_lea.vmem %s2330_s1, %s2477_s7  ;;  %p1272_p6 = scmp.lt.s32.totalorder %s2193_s10, 127  ;;  %1734 = vmatpush3.bf16.msra.mxu1 %v1731_v31 }
  0x98   :  { %s728_s24 = scalar_select %p727_p5, %s2193_s10, 0  ;;  %v721_v5 = vld [vmem:[%s720_s25] sm:$0x1]  ;;  %1736 = vmatprep.subr.bf16.mxu1 %v1735_v34 }
  0x99   :  { %s1277_s11 = sld [smem:[#allocation4 + $0x10b]]  ;;  %722 = vst [vmem:[#allocation2 + $0x9] sm:$0x1] %v721_v5  ;;  %s1289_s15 = sld [smem:[#allocation4 + $0x10d]] }
  0x9a   :  { %s2479_s24 = smov (!%p1272_p6, %s728_s24), 127  ;;  %s1295_s22 = sld [smem:[#allocation4 + $0x10e]] }
  0x9b   :  { %s731_s26 = scalar_lea.vmem %s2330_s1, %s2479_s24  ;;  %s2243_s27 = sld [smem:[#allocation4 + $0x10f]]  ;;  %1738 = vmatpush3.bf16.msra.mxu1 %v1735_v34 }
  0x9c   :  { %v789_v6 = vld [vmem:[#allocation2] sm:$0xff]  ;;  %p749_p9 = scmp.gt.s32.totalorder %s1283_s18, 0  ;;  %p1284_p10 = scmp.lt.s32.totalorder %s1283_s18, 127  ;;  %1740 = vmatprep.subr.bf16.mxu1 %v1739_v37 }
  0x9d   :  { %1577 = vmatprep.mubr.f32.mxu0 %v789_v6  ;;  %v732_v7 = vld [vmem:[%s731_s26] sm:$0x1] }
  0x9e   :  { %733 = vst [vmem:[#allocation2 + $0xa] sm:$0x1] %v732_v7  ;;  %s2483_s18 = smov (!%p749_p9, %s1283_s18), 0 }
  0x9f   :  { %p738_p7 = scmp.gt.s32.totalorder %s1277_s11, 0  ;;  %p1278_p8 = scmp.lt.s32.totalorder %s1277_s11, 127  ;;  %1742 = vmatpush3.bf16.msra.mxu1 %v1739_v37 }
  0xa0   :  { %s2487_s18 = smov (!%p1284_p10, %s2483_s18), 127  ;;  %p760_p11 = scmp.gt.s32.totalorder %s1289_s15, 0 }
  0xa1   :  { %s2481_s11 = smov (!%p738_p7, %s1277_s11), 0  ;;  %s753_s0 = scalar_lea.vmem %s2330_s1, %s2487_s18 }
  0xa2   :  { %s2485_s11 = smov (!%p1278_p8, %s2481_s11), 127  ;;  %p1290_p12 = scmp.lt.s32.totalorder %s1289_s15, 127  ;;  %v754_v9 = vld [vmem:[%s753_s0] sm:$0x1] }
  0xa3   :  { %s742_s28 = scalar_lea.vmem %s2330_s1, %s2485_s11  ;;  %s2489_s15 = smov (!%p760_p11, %s1289_s15), 0  ;;  %755 = vst [vmem:[#allocation2 + $0xc] sm:$0x1] %v754_v9 }
  0xa4   :  { %v743_v8 = vld [vmem:[%s742_s28] sm:$0x1]  ;;  %p771_p13 = scmp.gt.s32.totalorder %s1295_s22, 0  ;;  %p1296_p0 = scmp.lt.s32.totalorder %s1295_s22, 127 }
  0xa5   :  { %744 = vst [vmem:[#allocation2 + $0xb] sm:$0x1] %v743_v8  ;;  %s2491_s15 = smov (!%p1290_p12, %s2489_s15), 127  ;;  %p782_p1 = scmp.gt.s32.totalorder %s2243_s27, 0 }
  0xa6   :  { %s2493_s22 = smov (!%p771_p13, %s1295_s22), 0  ;;  %s764_s2 = scalar_lea.vmem %s2330_s1, %s2491_s15 }
  0xa7   :  { %v765_v10 = vld [vmem:[%s764_s2] sm:$0x1]  ;;  %s2495_s22 = smov (!%p1296_p0, %s2493_s22), 127  ;;  %p1302_p2 = scmp.lt.s32.totalorder %s2243_s27, 127 }
  0xa8   :  { %766 = vst [vmem:[#allocation2 + $0xd] sm:$0x1] %v765_v10  ;;  %s783_s17 = scalar_select %p782_p1, %s2243_s27, 0 }
  0xa9   :  { %s775_s13 = scalar_lea.vmem %s2330_s1, %s2495_s22  ;;  %s1786_s15 = smov [#allocation5]  }
  0xaa   :  { %v776_v11 = vld [vmem:[%s775_s13] sm:$0x1]  ;;  %s2497_s17 = smov (!%p1302_p2, %s783_s17), 127 }
  0xab   :  { %777 = vst [vmem:[#allocation2 + $0xe] sm:$0x1] %v776_v11  ;;  %s786_s14 = scalar_lea.vmem %s2330_s1, %s2497_s17  ;;  %s960_s1 = sshll.u32 %s1786_s15, 4  ;;  %s961_s1 = int_to_ptr.vmem [resolvable:$true] %s960_s1 }
  0xac   :  { %v787_v12 = vld [vmem:[%s786_s14] sm:$0x1]  ;;  %s1759_s22 = scalar_lea.vmem %s961_s1, 256  ;;  %p1764_p4 = scmp.lt.s32.totalorder %s961_s1, %s961_s1 }
  0xad   :  { %788 = vst [vmem:[#allocation2 + $0xf] sm:$0x1] %v787_v12  ;;  %p1760_p3 = scmp.ne.s32.totalorder %s961_s1, %s1759_s22  ;;  %p1765_p5 = scmp.lt.s32.totalorder %s1759_s22, %s1759_s22 }
  0xaf   :  { %p1766_p6 = por %p1765_p5, %p1764_p4 }
  0xb1   :  { %p1767_p7 = pnand %p1766_p6, %p1760_p3 }
  0xb4   :  { %v790_v13 = vld [vmem:[#allocation2 + $0x8] sm:$0xff] }
  0xb5   :  { %1578 = vmatmul.mubr.f32.vlgmr.msra.gmra.mrb[2].mxu0 %v790_v13 }
 0x13b   :  { %v1509_v38 = vpop.f32.mrb[0].mxu0 }
 0x13c   :  { %v279_v39 = vpop.f32.mrb[1].mxu0  ;;  %v285_v41 = vadd.f32 %v1509_v38, %v1019_v40 }
 0x13d   :  { %v280_v42 = vadd.f32 %v1019_v40, %v279_v39 }
 0x13e   :  { %v289_v44 = vmax.f32 %v285_v41, 0.0 }
 0x13f   :  { %v288_v47 = vmax.f32 %v280_v42, 0.0 }
 0x155   :  { %v1544_v43 = vpop.f32.mrb[0].mxu1 }
 0x156   :  { %v606_v45 = vadd.f32 %v1544_v43, %v1019_v40  ;;  %v600_v46 = vpop.f32.mrb[1].mxu1 }
 0x157   :  { %v601_v48 = vadd.f32 %v1019_v40, %v600_v46 }
 0x158   :  { %v610_v49 = vmax.f32 %v606_v45, 0.0 }
 0x159   :  { %v609_v50 = vmax.f32 %v601_v48, 0.0 }
 0x15a   :  { %v612_v51 = vadd.f32 %v610_v49, %v289_v44 }
 0x15b   :  { %v611_v52 = vadd.f32 %v609_v50, %v288_v47 }
 0x188   :  { %v1579_v53 = vpop.f32.mrb[2].mxu0 }
 0x189   :  { %v863_v54 = vadd.f32 %v1579_v53, %v1019_v40  ;;  %v857_v55 = vpop.f32.mrb[3].mxu0 }
 0x18a   :  { %v858_v56 = vadd.f32 %v1019_v40, %v857_v55 }
 0x18b   :  { %v867_v57 = vmax.f32 %v863_v54, 0.0 }
 0x18c   :  { %v866_v58 = vmax.f32 %v858_v56, 0.0 }
 0x18d   :  { %v869_v59 = vadd.f32 %v867_v57, %v612_v51 }
 0x18e   :  { %v868_v60 = vadd.f32 %v866_v58, %v611_v52 }
 0x190   :  { %1612 = vmatprep.mubr.f32.mxu1 %v868_v60 }
 0x191   :  { %1613 = vmatmul.mubr.f32.vlgmr.msra.gmra.mrb[2].mxu1 %v869_v59 }
 0x264   :  { %v1614_v3 = vpop.f32.mrb[2].mxu1 }
 0x265   :  { %v950_v4 = vadd.f32 %v1614_v3, %v876_v2  ;;  %v944_v5 = vpop.f32.mrb[3].mxu1 }
 0x266   :  { %v945_v6 = vadd.f32 %v944_v5, %v876_v2 }
 0x267   :  { %954 = vst [vmem:[#allocation5 + $0x8] sm:$0xff] %v950_v4 }
 0x268   :  { %953 = vst [vmem:[#allocation5] sm:$0xff] %v945_v6 }
 0x269   :  { %1770 = shalt.err (!%p1767_p7)
}
 0x26a   :  { %s1771_s7 = scalar_lea.hbm %s2335_s6, 256 }
 0x26b   :  { %p1772_p8 = scmp.ne.s32.totalorder %s2335_s6, %s1771_s7  ;;  %p1775_p9 = scmp.lt.u32.totalorder %s1771_s7, %s2335_s6 }
 0x26d   :  { %p1777_p10 = pnand %p1775_p9, %p1772_p8 }
 0x26f   :  { %1780 = shalt.err (!%p1777_p10)
}
 0x270   :  { %s1787_s0 = smov 128   ;;  %s1788_s30 = smov 8  }
 0x271   :  { %966 = dma.vmem_to_hbm [thread:$0]  %s961_s1, 256, %s2335_s6, [#allocation6], %s1787_s0, %s1787_s0, %s1788_s30  }
 0x272   :  { %1783 = dma.done.wait [#allocation6], 256  }
 0x273   :  { %1784 = vsyncadd [#allocation6], 4294967040 }
 0x274   :  { %970 = vsyncpa [#allocation6], 1 }

</bundles_post_ra>
